<compile_context>
chip_gen: v5e
topology: v5e:2x2
jax: 0.10.0
libtpu: 0.0.40
codegen_flags: <defaults>
</compile_context>

<pallas_src>
import functools
import math

import jax
import jax.numpy as jnp
from jax import lax
from jax.experimental import pallas as pl
from jax.experimental.pallas import tpu as pltpu


def _layernorm_f32(v, gamma, beta, eps=1e-5):
    mu = jnp.mean(v, axis=-1, keepdims=True)
    var = jnp.mean((v - mu) ** 2, axis=-1, keepdims=True)
    return (v - mu) * lax.rsqrt(var + eps) * gamma + beta


def _gelu_exact(x):
    # PyTorch nn.GELU() default is the exact erf formulation (keep bit-parity).
    # TODO(synk): tanh-approx GELU would move this to the EUP slot (near-free
    #             on v5e) but is not bit-identical to nn.GELU().
    return 0.5 * x * (1.0 + lax.erf(x * jnp.float32(1.0 / math.sqrt(2.0))))


def transformer_block_kernel(
    x_ref,            # (TB, S, E) f32
    g1_ref, b1_ref,   # (1, E) f32 — LayerNorm1
    g2_ref, b2_ref,   # (1, E) f32 — LayerNorm2
    win_t_ref,        # (E, 3E) bf16  in_proj_weight^T
    bin_ref,          # (1, 3E) f32   in_proj_bias
    wout_t_ref,       # (E, E)  bf16  out_proj.weight^T
    bout_ref,         # (1, E)  f32   out_proj.bias
    w1_t_ref,         # (E, 4E) bf16  mlp[0].weight^T
    bm1_ref,          # (1, 4E) f32   mlp[0].bias
    w2_t_ref,         # (4E, E) bf16  mlp[2].weight^T
    bm2_ref,          # (1, E)  f32   mlp[2].bias
    o_ref,            # (TB, S, E)
    attn_scr,         # (TB*S, E) f32 VMEM scratch (attention context)
    *, seq_len, embed_dim, num_heads, batch_tile, q_tile,
):
    S, E, H = seq_len, embed_dim, num_heads
    TB, TQ = batch_tile, q_tile
    Dh = E // H
    nq = S // TQ
    scale = jnp.float32(1.0 / math.sqrt(Dh))
    # Scores stay f32 so -1e30 is safe (would overflow in a bf16 variant).
    NEG = jnp.float32(-1e30)

    x = x_ref[...].astype(jnp.float32).reshape(TB * S, E)        # (TB*S, E)

    # ---- norm1 + fused QKV projection (M = TB*S rows per MXU pass) ----------
    nx = _layernorm_f32(x, g1_ref[0], b1_ref[0])
    qkv = jnp.dot(nx.astype(jnp.bfloat16), win_t_ref[...],
                  preferred_element_type=jnp.float32) + bin_ref[0]  # (TB*S, 3E)
    qkv_b = qkv.astype(jnp.bfloat16)          # one VPU pack pass, sliced below

    # ---- causal MHA, q-tiled: live scores tile is only (H, TQ, S) -----------
    for b in range(TB):                                  # static unroll
        rows = slice(b * S, (b + 1) * S)
        # (S, H, Dh) -> (H, S, Dh): leading batch dim for the batched einsums.
        # TODO(synk): non-leading-batch einsum ('qhd,khd->hqk') would drop
        #             these relayouts where Mosaic dot_general supports it.
        qh = jnp.transpose(qkv_b[rows, 0 * E:1 * E].reshape(S, H, Dh), (1, 0, 2))
        kh = jnp.transpose(qkv_b[rows, 1 * E:2 * E].reshape(S, H, Dh), (1, 0, 2))
        vh = jnp.transpose(qkv_b[rows, 2 * E:3 * E].reshape(S, H, Dh), (1, 0, 2))

        for t in range(nq):                              # static unroll
            q0 = t * TQ
            qt = qh[:, q0:q0 + TQ, :]                               # (H, TQ, Dh)
            s = jnp.einsum('hqd,hkd->hqk', qt, kh,
                           preferred_element_type=jnp.float32) * scale  # (H,TQ,S)

            # Single 2-D mask, broadcast across heads (no (H,S,S) iotas).
            row = lax.broadcasted_iota(jnp.int32, (TQ, S), 0) + q0
            col = lax.broadcasted_iota(jnp.int32, (TQ, S), 1)
            s = jnp.where(col > row, NEG, s)

            m = jnp.max(s, axis=-1, keepdims=True)
            p = jnp.exp(s - m)
            denom = jnp.sum(p, axis=-1, keepdims=True)
            p = p * pl.reciprocal(denom, approx=True)               # EUP vrcp

            ctx = jnp.einsum('hqk,hkd->hqd', p.astype(jnp.bfloat16), vh,
                             preferred_element_type=jnp.float32)    # (H, TQ, Dh)
            ctx = jnp.transpose(ctx, (1, 0, 2)).reshape(TQ, E)      # merge heads
            attn_scr[b * S + q0:b * S + q0 + TQ, :] = ctx

    attn = attn_scr[...]                                            # (TB*S, E)
    attn_out = jnp.dot(attn.astype(jnp.bfloat16), wout_t_ref[...],
                       preferred_element_type=jnp.float32) + bout_ref[0]

    # ---- first residual (residual dropout = identity in eval) ---------------
    x = x + attn_out

    # ---- norm2 + MLP (GELU exact-erf, f32 elementwise) -----------------------
    nx2 = _layernorm_f32(x, g2_ref[0], b2_ref[0])
    hdn = jnp.dot(nx2.astype(jnp.bfloat16), w1_t_ref[...],
                  preferred_element_type=jnp.float32) + bm1_ref[0]  # (TB*S, 4E)
    hdn = _gelu_exact(hdn)
    mlp_out = jnp.dot(hdn.astype(jnp.bfloat16), w2_t_ref[...],
                      preferred_element_type=jnp.float32) + bm2_ref[0]

    x = x + mlp_out
    o_ref[...] = x.reshape(TB, S, E).astype(o_ref.dtype)


def prepare_params(params):
    """One-time parameter prep: transpose weights, cast to bf16, reshape biases."""
    E = params["ln1_gamma"].shape[0]
    f32, bf16 = jnp.float32, jnp.bfloat16
    return {
        "ln1_gamma": params["ln1_gamma"].reshape(1, E).astype(f32),
        "ln1_beta": params["ln1_beta"].reshape(1, E).astype(f32),
        "ln2_gamma": params["ln2_gamma"].reshape(1, E).astype(f32),
        "ln2_beta": params["ln2_beta"].reshape(1, E).astype(f32),
        "win_t": params["in_proj_weight"].T.astype(bf16),        # (E, 3E)
        "bin": params["in_proj_bias"].reshape(1, 3 * E).astype(f32),
        "wout_t": params["out_proj_weight"].T.astype(bf16),      # (E, E)
        "bout": params["out_proj_bias"].reshape(1, E).astype(f32),
        "w1_t": params["mlp_w1"].T.astype(bf16),                 # (E, 4E)
        "bm1": params["mlp_b1"].reshape(1, 4 * E).astype(f32),
        "w2_t": params["mlp_w2"].T.astype(bf16),                 # (4E, E)
        "bm2": params["mlp_b2"].reshape(1, E).astype(f32),
    }


def _pick_vmem_limit_bytes():
    # ~capacity-minus-headroom: ~112 MiB on v5e/v6e (128 MiB), ~48 MiB on v7x (64 MiB).
    limit = 48 * 1024 * 1024
    try:
        cap = int(pltpu.get_tpu_info().vmem_capacity_bytes)
        if cap > 0:
            limit = max(32 * 1024 * 1024,
                        min(cap - 16 * 1024 * 1024, 112 * 1024 * 1024))
    except Exception:
        pass
    return limit


def _pick_batch_tile(batch, seq, target_rows=256):
    # Fold batch elements so the dense matmuls see >= ~256 rows per MXU pass.
    tb = min(batch, max(1, -(-target_rows // seq)))
    while batch % tb:
        tb -= 1
    return tb


def _pick_q_tile(seq):
    if seq <= 256:
        return seq
    for t in (256, 128, 64, 32, 16, 8):
        if seq % t == 0:
            return t
    return seq


def transformer_block(x, prepped, *, num_heads, batch_tile=None, q_tile=None):
    B, S, E = x.shape
    H = num_heads
    TB = batch_tile if batch_tile is not None else _pick_batch_tile(B, S)
    TQ = q_tile if q_tile is not None else _pick_q_tile(S)
    assert B % TB == 0 and S % TQ == 0 and E % H == 0

    kern = functools.partial(
        transformer_block_kernel, seq_len=S, embed_dim=E, num_heads=H,
        batch_tile=TB, q_tile=TQ)

    weights = [
        prepped["ln1_gamma"], prepped["ln1_beta"],
        prepped["ln2_gamma"], prepped["ln2_beta"],
        prepped["win_t"], prepped["bin"],
        prepped["wout_t"], prepped["bout"],
        prepped["w1_t"], prepped["bm1"],
        prepped["w2_t"], prepped["bm2"],
    ]

    def const_spec(arr):
        # Constant index map + single buffer: weights stay resident across
        # grid steps and are not double-buffered.
        return pl.BlockSpec(arr.shape, lambda i: (0, 0),
                            pipeline_mode=pl.Buffered(1))

    in_specs = [pl.BlockSpec((TB, S, E), lambda i: (i, 0, 0))]
    in_specs += [const_spec(w) for w in weights]

    # Advisory cost estimate so XLA schedules surrounding ops sensibly.
    flops = B * (24 * S * E * E + 4 * S * S * E)
    transcendentals = B * (H * S * S + 4 * S * E)
    bytes_accessed = (2 * B * S * E * 4            # x in/out (f32)
                      + 12 * E * E * 2             # bf16 weights
                      + 13 * E * 4)                # biases + LN params (f32)

    return pl.pallas_call(
        kern,
        out_shape=jax.ShapeDtypeStruct((B, S, E), x.dtype),
        grid_spec=pltpu.PrefetchScalarGridSpec(
            num_scalar_prefetch=0,
            grid=(B // TB,),
            in_specs=in_specs,
            out_specs=pl.BlockSpec((TB, S, E), lambda i: (i, 0, 0)),
            scratch_shapes=[pltpu.VMEM((TB * S, E), jnp.float32)],
        ),
        compiler_params=pltpu.CompilerParams(
            dimension_semantics=("parallel",),
            vmem_limit_bytes=_pick_vmem_limit_bytes(),
        ),
        cost_estimate=pl.CostEstimate(
            flops=flops,
            transcendentals=transcendentals,
            bytes_accessed=bytes_accessed),
    )(x, *weights)


def init_params(key, embed_dim):
    E = embed_dim
    ks = jax.random.split(key, 8)
    s = 0.02
    return {
        "ln1_gamma": jnp.ones((E,), jnp.float32),
        "ln1_beta": jnp.zeros((E,), jnp.float32),
        "ln2_gamma": jnp.ones((E,), jnp.float32),
        "ln2_beta": jnp.zeros((E,), jnp.float32),
        "in_proj_weight": s * jax.random.normal(ks[0], (3 * E, E), jnp.float32),
        "in_proj_bias": s * jax.random.normal(ks[1], (3 * E,), jnp.float32),
        "out_proj_weight": s * jax.random.normal(ks[2], (E, E), jnp.float32),
        "out_proj_bias": s * jax.random.normal(ks[3], (E,), jnp.float32),
        "mlp_w1": s * jax.random.normal(ks[4], (4 * E, E), jnp.float32),
        "mlp_b1": s * jax.random.normal(ks[5], (4 * E,), jnp.float32),
        "mlp_w2": s * jax.random.normal(ks[6], (E, 4 * E), jnp.float32),
        "mlp_b2": s * jax.random.normal(ks[7], (E,), jnp.float32),
    }


if __name__ == "__main__":
    B, S, E, H = 2, 8, 32, 4     # batch, seq, embedding_dim, num_heads
    key = jax.random.PRNGKey(0)
    kx, kp = jax.random.split(key)
    x = jax.random.normal(kx, (B, S, E), jnp.float32)
    params = init_params(kp, E)
    prepped = prepare_params(params)     # one-time weight prep (transpose+bf16)

    out = transformer_block(x, prepped, num_heads=H)
    jax.block_until_ready(out)
    assert out.shape == (B, S, E)
    assert bool(jnp.all(jnp.isfinite(out)))
    print("KERNEL_OK")
</pallas_src>

<mosaic_0001>
module attributes {stable_mosaic.version = 11 : i64} {
  func.func @transformer_block_kernel(%arg0: i32, %arg1: memref<2x8x32xf32, #tpu.memory_space<vmem>>, %arg2: memref<1x32xf32, #tpu.memory_space<vmem>>, %arg3: memref<1x32xf32, #tpu.memory_space<vmem>>, %arg4: memref<1x32xf32, #tpu.memory_space<vmem>>, %arg5: memref<1x32xf32, #tpu.memory_space<vmem>>, %arg6: memref<32x96xbf16, #tpu.memory_space<vmem>>, %arg7: memref<1x96xf32, #tpu.memory_space<vmem>>, %arg8: memref<32x32xbf16, #tpu.memory_space<vmem>>, %arg9: memref<1x32xf32, #tpu.memory_space<vmem>>, %arg10: memref<32x128xbf16, #tpu.memory_space<vmem>>, %arg11: memref<1x128xf32, #tpu.memory_space<vmem>>, %arg12: memref<128x32xbf16, #tpu.memory_space<vmem>>, %arg13: memref<1x32xf32, #tpu.memory_space<vmem>>, %arg14: memref<2x8x32xf32, #tpu.memory_space<vmem>>, %arg15: memref<16x32xf32, #tpu.memory_space<vmem>>) attributes {dimension_semantics = [#tpu.dimension_semantics<parallel>], iteration_bounds = array<i64: 1>, scalar_prefetch = 0 : i64, scratch_operands = 1 : i64, tpu.core_type = #tpu.core_type<tc>, window_params = [{transform_indices = @transform_0, window_bounds = array<i64: 2, 8, 32>}, {pipeline_mode = #tpu.pipeline_mode<synchronous>, transform_indices = @transform_1, window_bounds = array<i64: 1, 32>}, {pipeline_mode = #tpu.pipeline_mode<synchronous>, transform_indices = @transform_2, window_bounds = array<i64: 1, 32>}, {pipeline_mode = #tpu.pipeline_mode<synchronous>, transform_indices = @transform_3, window_bounds = array<i64: 1, 32>}, {pipeline_mode = #tpu.pipeline_mode<synchronous>, transform_indices = @transform_4, window_bounds = array<i64: 1, 32>}, {pipeline_mode = #tpu.pipeline_mode<synchronous>, transform_indices = @transform_5, window_bounds = array<i64: 32, 96>}, {pipeline_mode = #tpu.pipeline_mode<synchronous>, transform_indices = @transform_6, window_bounds = array<i64: 1, 96>}, {pipeline_mode = #tpu.pipeline_mode<synchronous>, transform_indices = @transform_7, window_bounds = array<i64: 32, 32>}, {pipeline_mode = #tpu.pipeline_mode<synchronous>, transform_indices = @transform_8, window_bounds = array<i64: 1, 32>}, {pipeline_mode = #tpu.pipeline_mode<synchronous>, transform_indices = @transform_9, window_bounds = array<i64: 32, 128>}, {pipeline_mode = #tpu.pipeline_mode<synchronous>, transform_indices = @transform_10, window_bounds = array<i64: 1, 128>}, {pipeline_mode = #tpu.pipeline_mode<synchronous>, transform_indices = @transform_11, window_bounds = array<i64: 128, 32>}, {pipeline_mode = #tpu.pipeline_mode<synchronous>, transform_indices = @transform_12, window_bounds = array<i64: 1, 32>}, {transform_indices = @transform_13, window_bounds = array<i64: 2, 8, 32>}]} {
    %c0 = arith.constant 0 : index
    %c0_0 = arith.constant 0 : index
    %c0_1 = arith.constant 0 : index
    %0 = vector.load %arg1[%c0, %c0_0, %c0_1] : memref<2x8x32xf32, #tpu.memory_space<vmem>>, vector<2x8x32xf32>
    %1 = vector.shape_cast %0 : vector<2x8x32xf32> to vector<16x32xf32>
    %c0_2 = arith.constant 0 : index
    %c0_3 = arith.constant 0 : index
    %2 = vector.load %arg2[%c0_2, %c0_3] : memref<1x32xf32, #tpu.memory_space<vmem>>, vector<1x32xf32>
    %3 = vector.shape_cast %2 : vector<1x32xf32> to vector<32xf32>
    %c0_4 = arith.constant 0 : index
    %c0_5 = arith.constant 0 : index
    %4 = vector.load %arg3[%c0_4, %c0_5] : memref<1x32xf32, #tpu.memory_space<vmem>>, vector<1x32xf32>
    %5 = vector.shape_cast %4 : vector<1x32xf32> to vector<32xf32>
    %cst = arith.constant dense<0.000000e+00> : vector<16xf32>
    %6 = vector.multi_reduction <add>, %1, %cst [1] : vector<16x32xf32> to vector<16xf32>
    %7 = vector.shape_cast %6 : vector<16xf32> to vector<16x1xf32>
    %cst_6 = arith.constant 3.200000e+01 : f32
    %8 = vector.broadcast %cst_6 : f32 to vector<16x1xf32>
    %9 = arith.divf %7, %8 : vector<16x1xf32>
    %10 = vector.broadcast %9 : vector<16x1xf32> to vector<16x32xf32>
    %11 = arith.subf %1, %10 : vector<16x32xf32>
    %12 = arith.mulf %11, %11 : vector<16x32xf32>
    %cst_7 = arith.constant dense<0.000000e+00> : vector<16xf32>
    %13 = vector.multi_reduction <add>, %12, %cst_7 [1] : vector<16x32xf32> to vector<16xf32>
    %14 = vector.shape_cast %13 : vector<16xf32> to vector<16x1xf32>
    %cst_8 = arith.constant 3.200000e+01 : f32
    %15 = vector.broadcast %cst_8 : f32 to vector<16x1xf32>
    %16 = arith.divf %14, %15 : vector<16x1xf32>
    %17 = vector.broadcast %9 : vector<16x1xf32> to vector<16x32xf32>
    %18 = arith.subf %1, %17 : vector<16x32xf32>
    %cst_9 = arith.constant 9.99999974E-6 : f32
    %19 = vector.broadcast %cst_9 : f32 to vector<16x1xf32>
    %20 = arith.addf %16, %19 : vector<16x1xf32>
    %21 = math.rsqrt %20 : vector<16x1xf32>
    %22 = vector.broadcast %21 : vector<16x1xf32> to vector<16x32xf32>
    %23 = arith.mulf %18, %22 : vector<16x32xf32>
    %24 = vector.shape_cast %3 : vector<32xf32> to vector<1x32xf32>
    %25 = vector.broadcast %24 : vector<1x32xf32> to vector<16x32xf32>
    %26 = arith.mulf %23, %25 : vector<16x32xf32>
    %27 = vector.shape_cast %5 : vector<32xf32> to vector<1x32xf32>
    %28 = vector.broadcast %27 : vector<1x32xf32> to vector<16x32xf32>
    %29 = arith.addf %26, %28 : vector<16x32xf32>
    %30 = arith.truncf %29 : vector<16x32xf32> to vector<16x32xbf16>
    %c0_10 = arith.constant 0 : index
    %c0_11 = arith.constant 0 : index
    %31 = vector.load %arg6[%c0_10, %c0_11] : memref<32x96xbf16, #tpu.memory_space<vmem>>, vector<32x96xbf16>
    %cst_12 = arith.constant dense<0.000000e+00> : vector<16x96xf32>
    %32 = tpu.matmul %30, %31, %cst_12 {dimension_numbers = #tpu.dot_dimension_numbers<[1], [0], [0], [1], [0, 0, 1, 1], [], []>} : vector<16x32xbf16>, vector<32x96xbf16>, vector<16x96xf32> -> vector<16x96xf32>
    %c0_13 = arith.constant 0 : index
    %c0_14 = arith.constant 0 : index
    %33 = vector.load %arg7[%c0_13, %c0_14] : memref<1x96xf32, #tpu.memory_space<vmem>>, vector<1x96xf32>
    %34 = vector.shape_cast %33 : vector<1x96xf32> to vector<96xf32>
    %35 = vector.shape_cast %34 : vector<96xf32> to vector<1x96xf32>
    %36 = vector.broadcast %35 : vector<1x96xf32> to vector<16x96xf32>
    %37 = arith.addf %32, %36 : vector<16x96xf32>
    %38 = arith.truncf %37 : vector<16x96xf32> to vector<16x96xbf16>
    %39 = vector.extract_strided_slice %38 {offsets = [0, 0], sizes = [8, 32], strides = [1, 1]} : vector<16x96xbf16> to vector<8x32xbf16>
    %40 = vector.shape_cast %39 : vector<8x32xbf16> to vector<8x4x8xbf16>
    %41 = tpu.transpose %40, [1, 0, 2] : vector<8x4x8xbf16> -> vector<4x8x8xbf16>
    %42 = vector.extract_strided_slice %38 {offsets = [0, 32], sizes = [8, 32], strides = [1, 1]} : vector<16x96xbf16> to vector<8x32xbf16>
    %43 = vector.shape_cast %42 : vector<8x32xbf16> to vector<8x4x8xbf16>
    %44 = tpu.transpose %43, [1, 0, 2] : vector<8x4x8xbf16> -> vector<4x8x8xbf16>
    %45 = vector.extract_strided_slice %38 {offsets = [0, 64], sizes = [8, 32], strides = [1, 1]} : vector<16x96xbf16> to vector<8x32xbf16>
    %46 = vector.shape_cast %45 : vector<8x32xbf16> to vector<8x4x8xbf16>
    %47 = tpu.transpose %46, [1, 0, 2] : vector<8x4x8xbf16> -> vector<4x8x8xbf16>
    "tpu.trace_start"() <{level = 10 : i32, message = "hqd,hkd->hqk"}> : () -> ()
    %cst_15 = arith.constant dense<0.000000e+00> : vector<4x8x8xf32>
    %48 = tpu.matmul %41, %44, %cst_15 {dimension_numbers = #tpu.dot_dimension_numbers<[2], [2], [1], [1], [0, 0, 0, 1, 1, 1], [0], [0]>} : vector<4x8x8xbf16>, vector<4x8x8xbf16>, vector<4x8x8xf32> -> vector<4x8x8xf32>
    "tpu.trace_stop"() : () -> ()
    %cst_16 = arith.constant 0.353553385 : f32
    %49 = vector.broadcast %cst_16 : f32 to vector<4x8x8xf32>
    %50 = arith.mulf %48, %49 : vector<4x8x8xf32>
    %51 = tpu.iota {dimensions = array<i32: 0>} : vector<8x8xi32>
    %c0_i32 = arith.constant 0 : i32
    %52 = vector.broadcast %c0_i32 : i32 to vector<8x8xi32>
    %53 = arith.addi %51, %52 : vector<8x8xi32>
    %54 = tpu.iota {dimensions = array<i32: 1>} : vector<8x8xi32>
    %55 = arith.cmpi sgt, %54, %53 : vector<8x8xi32>
    %cst_17 = arith.constant -1.000000e+30 : f32
    %56 = vector.shape_cast %55 : vector<8x8xi1> to vector<1x8x8xi1>
    %57 = vector.broadcast %56 : vector<1x8x8xi1> to vector<4x8x8xi1>
    %58 = vector.broadcast %cst_17 : f32 to vector<4x8x8xf32>
    %59 = arith.select %57, %58, %50 : vector<4x8x8xi1>, vector<4x8x8xf32>
    %cst_18 = arith.constant dense<0xFF800000> : vector<4x8xf32>
    %60 = vector.multi_reduction <maximumf>, %59, %cst_18 [2] : vector<4x8x8xf32> to vector<4x8xf32>
    %61 = vector.shape_cast %60 : vector<4x8xf32> to vector<4x8x1xf32>
    %62 = vector.broadcast %61 : vector<4x8x1xf32> to vector<4x8x8xf32>
    %63 = arith.subf %59, %62 : vector<4x8x8xf32>
    %64 = math.exp %63 : vector<4x8x8xf32>
    %cst_19 = arith.constant dense<0.000000e+00> : vector<4x8xf32>
    %65 = vector.multi_reduction <add>, %64, %cst_19 [2] : vector<4x8x8xf32> to vector<4x8xf32>
    %66 = vector.shape_cast %65 : vector<4x8xf32> to vector<4x8x1xf32>
    %67 = tpu.reciprocal %66 {approx = true} : vector<4x8x1xf32> -> vector<4x8x1xf32>
    %68 = vector.broadcast %67 : vector<4x8x1xf32> to vector<4x8x8xf32>
    %69 = arith.mulf %64, %68 : vector<4x8x8xf32>
    %70 = arith.truncf %69 : vector<4x8x8xf32> to vector<4x8x8xbf16>
    "tpu.trace_start"() <{level = 10 : i32, message = "hqk,hkd->hqd"}> : () -> ()
    %cst_20 = arith.constant dense<0.000000e+00> : vector<4x8x8xf32>
    %71 = tpu.matmul %70, %47, %cst_20 {dimension_numbers = #tpu.dot_dimension_numbers<[2], [1], [1], [2], [0, 0, 0, 1, 1, 2], [0], [0]>} : vector<4x8x8xbf16>, vector<4x8x8xbf16>, vector<4x8x8xf32> -> vector<4x8x8xf32>
    "tpu.trace_stop"() : () -> ()
    %72 = tpu.transpose %71, [1, 0, 2] : vector<4x8x8xf32> -> vector<8x4x8xf32>
    %73 = vector.shape_cast %72 : vector<8x4x8xf32> to vector<8x32xf32>
    %c0_21 = arith.constant 0 : index
    %c0_22 = arith.constant 0 : index
    %74 = vector.load %arg15[%c0_21, %c0_22] : memref<16x32xf32, #tpu.memory_space<vmem>>, vector<8x32xf32>
    tpu.vector_store %arg15[%c0_21, %c0_22], %73 {strides = array<i32>} : memref<16x32xf32, #tpu.memory_space<vmem>>, vector<8x32xf32>,
    %75 = vector.extract_strided_slice %38 {offsets = [8, 0], sizes = [8, 32], strides = [1, 1]} : vector<16x96xbf16> to vector<8x32xbf16>
    %76 = vector.shape_cast %75 : vector<8x32xbf16> to vector<8x4x8xbf16>
    %77 = tpu.transpose %76, [1, 0, 2] : vector<8x4x8xbf16> -> vector<4x8x8xbf16>
    %78 = vector.extract_strided_slice %38 {offsets = [8, 32], sizes = [8, 32], strides = [1, 1]} : vector<16x96xbf16> to vector<8x32xbf16>
    %79 = vector.shape_cast %78 : vector<8x32xbf16> to vector<8x4x8xbf16>
    %80 = tpu.transpose %79, [1, 0, 2] : vector<8x4x8xbf16> -> vector<4x8x8xbf16>
    %81 = vector.extract_strided_slice %38 {offsets = [8, 64], sizes = [8, 32], strides = [1, 1]} : vector<16x96xbf16> to vector<8x32xbf16>
    %82 = vector.shape_cast %81 : vector<8x32xbf16> to vector<8x4x8xbf16>
    %83 = tpu.transpose %82, [1, 0, 2] : vector<8x4x8xbf16> -> vector<4x8x8xbf16>
    "tpu.trace_start"() <{level = 10 : i32, message = "hqd,hkd->hqk"}> : () -> ()
    %cst_23 = arith.constant dense<0.000000e+00> : vector<4x8x8xf32>
    %84 = tpu.matmul %77, %80, %cst_23 {dimension_numbers = #tpu.dot_dimension_numbers<[2], [2], [1], [1], [0, 0, 0, 1, 1, 1], [0], [0]>} : vector<4x8x8xbf16>, vector<4x8x8xbf16>, vector<4x8x8xf32> -> vector<4x8x8xf32>
    "tpu.trace_stop"() : () -> ()
    %cst_24 = arith.constant 0.353553385 : f32
    %85 = vector.broadcast %cst_24 : f32 to vector<4x8x8xf32>
    %86 = arith.mulf %84, %85 : vector<4x8x8xf32>
    %87 = tpu.iota {dimensions = array<i32: 0>} : vector<8x8xi32>
    %c0_i32_25 = arith.constant 0 : i32
    %88 = vector.broadcast %c0_i32_25 : i32 to vector<8x8xi32>
    %89 = arith.addi %87, %88 : vector<8x8xi32>
    %90 = tpu.iota {dimensions = array<i32: 1>} : vector<8x8xi32>
    %91 = arith.cmpi sgt, %90, %89 : vector<8x8xi32>
    %cst_26 = arith.constant -1.000000e+30 : f32
    %92 = vector.shape_cast %91 : vector<8x8xi1> to vector<1x8x8xi1>
    %93 = vector.broadcast %92 : vector<1x8x8xi1> to vector<4x8x8xi1>
    %94 = vector.broadcast %cst_26 : f32 to vector<4x8x8xf32>
    %95 = arith.select %93, %94, %86 : vector<4x8x8xi1>, vector<4x8x8xf32>
    %cst_27 = arith.constant dense<0xFF800000> : vector<4x8xf32>
    %96 = vector.multi_reduction <maximumf>, %95, %cst_27 [2] : vector<4x8x8xf32> to vector<4x8xf32>
    %97 = vector.shape_cast %96 : vector<4x8xf32> to vector<4x8x1xf32>
    %98 = vector.broadcast %97 : vector<4x8x1xf32> to vector<4x8x8xf32>
    %99 = arith.subf %95, %98 : vector<4x8x8xf32>
    %100 = math.exp %99 : vector<4x8x8xf32>
    %cst_28 = arith.constant dense<0.000000e+00> : vector<4x8xf32>
    %101 = vector.multi_reduction <add>, %100, %cst_28 [2] : vector<4x8x8xf32> to vector<4x8xf32>
    %102 = vector.shape_cast %101 : vector<4x8xf32> to vector<4x8x1xf32>
    %103 = tpu.reciprocal %102 {approx = true} : vector<4x8x1xf32> -> vector<4x8x1xf32>
    %104 = vector.broadcast %103 : vector<4x8x1xf32> to vector<4x8x8xf32>
    %105 = arith.mulf %100, %104 : vector<4x8x8xf32>
    %106 = arith.truncf %105 : vector<4x8x8xf32> to vector<4x8x8xbf16>
    "tpu.trace_start"() <{level = 10 : i32, message = "hqk,hkd->hqd"}> : () -> ()
    %cst_29 = arith.constant dense<0.000000e+00> : vector<4x8x8xf32>
    %107 = tpu.matmul %106, %83, %cst_29 {dimension_numbers = #tpu.dot_dimension_numbers<[2], [1], [1], [2], [0, 0, 0, 1, 1, 2], [0], [0]>} : vector<4x8x8xbf16>, vector<4x8x8xbf16>, vector<4x8x8xf32> -> vector<4x8x8xf32>
    "tpu.trace_stop"() : () -> ()
    %108 = tpu.transpose %107, [1, 0, 2] : vector<4x8x8xf32> -> vector<8x4x8xf32>
    %109 = vector.shape_cast %108 : vector<8x4x8xf32> to vector<8x32xf32>
    %c8 = arith.constant 8 : index
    %c0_30 = arith.constant 0 : index
    %110 = vector.load %arg15[%c8, %c0_30] : memref<16x32xf32, #tpu.memory_space<vmem>>, vector<8x32xf32>
    tpu.vector_store %arg15[%c8, %c0_30], %109 {strides = array<i32>} : memref<16x32xf32, #tpu.memory_space<vmem>>, vector<8x32xf32>,
    %c0_31 = arith.constant 0 : index
    %c0_32 = arith.constant 0 : index
    %111 = vector.load %arg15[%c0_31, %c0_32] : memref<16x32xf32, #tpu.memory_space<vmem>>, vector<16x32xf32>
    %112 = arith.truncf %111 : vector<16x32xf32> to vector<16x32xbf16>
    %c0_33 = arith.constant 0 : index
    %c0_34 = arith.constant 0 : index
    %113 = vector.load %arg8[%c0_33, %c0_34] : memref<32x32xbf16, #tpu.memory_space<vmem>>, vector<32x32xbf16>
    %cst_35 = arith.constant dense<0.000000e+00> : vector<16x32xf32>
    %114 = tpu.matmul %112, %113, %cst_35 {dimension_numbers = #tpu.dot_dimension_numbers<[1], [0], [0], [1], [0, 0, 1, 1], [], []>} : vector<16x32xbf16>, vector<32x32xbf16>, vector<16x32xf32> -> vector<16x32xf32>
    %c0_36 = arith.constant 0 : index
    %c0_37 = arith.constant 0 : index
    %115 = vector.load %arg9[%c0_36, %c0_37] : memref<1x32xf32, #tpu.memory_space<vmem>>, vector<1x32xf32>
    %116 = vector.shape_cast %115 : vector<1x32xf32> to vector<32xf32>
    %117 = vector.shape_cast %116 : vector<32xf32> to vector<1x32xf32>
    %118 = vector.broadcast %117 : vector<1x32xf32> to vector<16x32xf32>
    %119 = arith.addf %114, %118 : vector<16x32xf32>
    %120 = arith.addf %1, %119 : vector<16x32xf32>
    %c0_38 = arith.constant 0 : index
    %c0_39 = arith.constant 0 : index
    %121 = vector.load %arg4[%c0_38, %c0_39] : memref<1x32xf32, #tpu.memory_space<vmem>>, vector<1x32xf32>
    %122 = vector.shape_cast %121 : vector<1x32xf32> to vector<32xf32>
    %c0_40 = arith.constant 0 : index
    %c0_41 = arith.constant 0 : index
    %123 = vector.load %arg5[%c0_40, %c0_41] : memref<1x32xf32, #tpu.memory_space<vmem>>, vector<1x32xf32>
    %124 = vector.shape_cast %123 : vector<1x32xf32> to vector<32xf32>
    %cst_42 = arith.constant dense<0.000000e+00> : vector<16xf32>
    %125 = vector.multi_reduction <add>, %120, %cst_42 [1] : vector<16x32xf32> to vector<16xf32>
    %126 = vector.shape_cast %125 : vector<16xf32> to vector<16x1xf32>
    %cst_43 = arith.constant 3.200000e+01 : f32
    %127 = vector.broadcast %cst_43 : f32 to vector<16x1xf32>
    %128 = arith.divf %126, %127 : vector<16x1xf32>
    %129 = vector.broadcast %128 : vector<16x1xf32> to vector<16x32xf32>
    %130 = arith.subf %120, %129 : vector<16x32xf32>
    %131 = arith.mulf %130, %130 : vector<16x32xf32>
    %cst_44 = arith.constant dense<0.000000e+00> : vector<16xf32>
    %132 = vector.multi_reduction <add>, %131, %cst_44 [1] : vector<16x32xf32> to vector<16xf32>
    %133 = vector.shape_cast %132 : vector<16xf32> to vector<16x1xf32>
    %cst_45 = arith.constant 3.200000e+01 : f32
    %134 = vector.broadcast %cst_45 : f32 to vector<16x1xf32>
    %135 = arith.divf %133, %134 : vector<16x1xf32>
    %136 = vector.broadcast %128 : vector<16x1xf32> to vector<16x32xf32>
    %137 = arith.subf %120, %136 : vector<16x32xf32>
    %cst_46 = arith.constant 9.99999974E-6 : f32
    %138 = vector.broadcast %cst_46 : f32 to vector<16x1xf32>
    %139 = arith.addf %135, %138 : vector<16x1xf32>
    %140 = math.rsqrt %139 : vector<16x1xf32>
    %141 = vector.broadcast %140 : vector<16x1xf32> to vector<16x32xf32>
    %142 = arith.mulf %137, %141 : vector<16x32xf32>
    %143 = vector.shape_cast %122 : vector<32xf32> to vector<1x32xf32>
    %144 = vector.broadcast %143 : vector<1x32xf32> to vector<16x32xf32>
    %145 = arith.mulf %142, %144 : vector<16x32xf32>
    %146 = vector.shape_cast %124 : vector<32xf32> to vector<1x32xf32>
    %147 = vector.broadcast %146 : vector<1x32xf32> to vector<16x32xf32>
    %148 = arith.addf %145, %147 : vector<16x32xf32>
    %149 = arith.truncf %148 : vector<16x32xf32> to vector<16x32xbf16>
    %c0_47 = arith.constant 0 : index
    %c0_48 = arith.constant 0 : index
    %150 = vector.load %arg10[%c0_47, %c0_48] : memref<32x128xbf16, #tpu.memory_space<vmem>>, vector<32x128xbf16>
    %cst_49 = arith.constant dense<0.000000e+00> : vector<16x128xf32>
    %151 = tpu.matmul %149, %150, %cst_49 {dimension_numbers = #tpu.dot_dimension_numbers<[1], [0], [0], [1], [0, 0, 1, 1], [], []>} : vector<16x32xbf16>, vector<32x128xbf16>, vector<16x128xf32> -> vector<16x128xf32>
    %c0_50 = arith.constant 0 : index
    %c0_51 = arith.constant 0 : index
    %152 = vector.load %arg11[%c0_50, %c0_51] : memref<1x128xf32, #tpu.memory_space<vmem>>, vector<1x128xf32>
    %153 = vector.shape_cast %152 : vector<1x128xf32> to vector<128xf32>
    %154 = vector.shape_cast %153 : vector<128xf32> to vector<1x128xf32>
    %155 = vector.broadcast %154 : vector<1x128xf32> to vector<16x128xf32>
    %156 = arith.addf %151, %155 : vector<16x128xf32>
    %cst_52 = arith.constant 5.000000e-01 : f32
    %157 = vector.broadcast %cst_52 : f32 to vector<16x128xf32>
    %158 = arith.mulf %157, %156 : vector<16x128xf32>
    %cst_53 = arith.constant 0.707106769 : f32
    %159 = vector.broadcast %cst_53 : f32 to vector<16x128xf32>
    %160 = arith.mulf %156, %159 : vector<16x128xf32>
    %161 = math.erf %160 : vector<16x128xf32>
    %cst_54 = arith.constant 1.000000e+00 : f32
    %162 = vector.broadcast %cst_54 : f32 to vector<16x128xf32>
    %163 = arith.addf %162, %161 : vector<16x128xf32>
    %164 = arith.mulf %158, %163 : vector<16x128xf32>
    %165 = arith.truncf %164 : vector<16x128xf32> to vector<16x128xbf16>
    %c0_55 = arith.constant 0 : index
    %c0_56 = arith.constant 0 : index
    %166 = vector.load %arg12[%c0_55, %c0_56] : memref<128x32xbf16, #tpu.memory_space<vmem>>, vector<128x32xbf16>
    %cst_57 = arith.constant dense<0.000000e+00> : vector<16x32xf32>
    %167 = tpu.matmul %165, %166, %cst_57 {dimension_numbers = #tpu.dot_dimension_numbers<[1], [0], [0], [1], [0, 0, 1, 1], [], []>} : vector<16x128xbf16>, vector<128x32xbf16>, vector<16x32xf32> -> vector<16x32xf32>
    %c0_58 = arith.constant 0 : index
    %c0_59 = arith.constant 0 : index
    %168 = vector.load %arg13[%c0_58, %c0_59] : memref<1x32xf32, #tpu.memory_space<vmem>>, vector<1x32xf32>
    %169 = vector.shape_cast %168 : vector<1x32xf32> to vector<32xf32>
    %170 = vector.shape_cast %169 : vector<32xf32> to vector<1x32xf32>
    %171 = vector.broadcast %170 : vector<1x32xf32> to vector<16x32xf32>
    %172 = arith.addf %167, %171 : vector<16x32xf32>
    %173 = arith.addf %120, %172 : vector<16x32xf32>
    %174 = vector.shape_cast %173 : vector<16x32xf32> to vector<2x8x32xf32>
    %c0_60 = arith.constant 0 : index
    %c0_61 = arith.constant 0 : index
    %c0_62 = arith.constant 0 : index
    %175 = vector.load %arg14[%c0_60, %c0_61, %c0_62] : memref<2x8x32xf32, #tpu.memory_space<vmem>>, vector<2x8x32xf32>
    tpu.vector_store %arg14[%c0_60, %c0_61, %c0_62], %174 {strides = array<i32>} : memref<2x8x32xf32, #tpu.memory_space<vmem>>, vector<2x8x32xf32>,
    return
  }
  func.func @transform_0(%arg0: i32) -> (i32, i32, i32) {
    %c0_i32 = arith.constant 0 : i32
    %c0_i32_0 = arith.constant 0 : i32
    %c0_i32_1 = arith.constant 0 : i32
    return %arg0, %c0_i32, %c0_i32_0 : i32, i32, i32
  }
  func.func @transform_1(%arg0: i32) -> (i32, i32) {
    %c0_i32 = arith.constant 0 : i32
    %c0_i32_0 = arith.constant 0 : i32
    %c0_i32_1 = arith.constant 0 : i32
    return %c0_i32, %c0_i32_0 : i32, i32
  }
  func.func @transform_2(%arg0: i32) -> (i32, i32) {
    %c0_i32 = arith.constant 0 : i32
    %c0_i32_0 = arith.constant 0 : i32
    %c0_i32_1 = arith.constant 0 : i32
    return %c0_i32, %c0_i32_0 : i32, i32
  }
  func.func @transform_3(%arg0: i32) -> (i32, i32) {
    %c0_i32 = arith.constant 0 : i32
    %c0_i32_0 = arith.constant 0 : i32
    %c0_i32_1 = arith.constant 0 : i32
    return %c0_i32, %c0_i32_0 : i32, i32
  }
  func.func @transform_4(%arg0: i32) -> (i32, i32) {
    %c0_i32 = arith.constant 0 : i32
    %c0_i32_0 = arith.constant 0 : i32
    %c0_i32_1 = arith.constant 0 : i32
    return %c0_i32, %c0_i32_0 : i32, i32
  }
  func.func @transform_5(%arg0: i32) -> (i32, i32) {
    %c0_i32 = arith.constant 0 : i32
    %c0_i32_0 = arith.constant 0 : i32
    %c0_i32_1 = arith.constant 0 : i32
    return %c0_i32, %c0_i32_0 : i32, i32
  }
  func.func @transform_6(%arg0: i32) -> (i32, i32) {
    %c0_i32 = arith.constant 0 : i32
    %c0_i32_0 = arith.constant 0 : i32
    %c0_i32_1 = arith.constant 0 : i32
    return %c0_i32, %c0_i32_0 : i32, i32
  }
  func.func @transform_7(%arg0: i32) -> (i32, i32) {
    %c0_i32 = arith.constant 0 : i32
    %c0_i32_0 = arith.constant 0 : i32
    %c0_i32_1 = arith.constant 0 : i32
    return %c0_i32, %c0_i32_0 : i32, i32
  }
  func.func @transform_8(%arg0: i32) -> (i32, i32) {
    %c0_i32 = arith.constant 0 : i32
    %c0_i32_0 = arith.constant 0 : i32
    %c0_i32_1 = arith.constant 0 : i32
    return %c0_i32, %c0_i32_0 : i32, i32
  }
  func.func @transform_9(%arg0: i32) -> (i32, i32) {
    %c0_i32 = arith.constant 0 : i32
    %c0_i32_0 = arith.constant 0 : i32
    %c0_i32_1 = arith.constant 0 : i32
    return %c0_i32, %c0_i32_0 : i32, i32
  }
  func.func @transform_10(%arg0: i32) -> (i32, i32) {
    %c0_i32 = arith.constant 0 : i32
    %c0_i32_0 = arith.constant 0 : i32
    %c0_i32_1 = arith.constant 0 : i32
    return %c0_i32, %c0_i32_0 : i32, i32
  }
  func.func @transform_11(%arg0: i32) -> (i32, i32) {
    %c0_i32 = arith.constant 0 : i32
    %c0_i32_0 = arith.constant 0 : i32
    %c0_i32_1 = arith.constant 0 : i32
    return %c0_i32, %c0_i32_0 : i32, i32
  }
  func.func @transform_12(%arg0: i32) -> (i32, i32) {
    %c0_i32 = arith.constant 0 : i32
    %c0_i32_0 = arith.constant 0 : i32
    %c0_i32_1 = arith.constant 0 : i32
    return %c0_i32, %c0_i32_0 : i32, i32
  }
  func.func @transform_13(%arg0: i32) -> (i32, i32, i32) {
    %c0_i32 = arith.constant 0 : i32
    %c0_i32_0 = arith.constant 0 : i32
    %c0_i32_1 = arith.constant 0 : i32
    return %arg0, %c0_i32, %c0_i32_0 : i32, i32, i32
  }
}

</mosaic_0001>

<bundles_post_ra>
// kernel: tpu_custom_call.1
= control target key start
LH: loop header
LB: loop body
LE: loop exit
PB: predicated region body
PF: predicated region fallthrough
CT: control target
= control target key end

     0   :  { %vm50_vm0 = vcmask 261120   ;;  %s2725_s0 = inlined_call_operand.vmem [shape: f32[2,8,32], index: 0, kind: input, shape index: {}]   ;;  %s2726_s1 = inlined_call_operand.vmem [shape: f32[1,32], index: 1, kind: input, shape index: {}]   ;;  %s2727_s2 = inlined_call_operand.vmem [shape: f32[1,32], index: 2, kind: input, shape index: {}]   ;;  %s2728_s3 = inlined_call_operand.vmem [shape: f32[1,32], index: 3, kind: input, shape index: {}]   ;;  %s2729_s4 = inlined_call_operand.vmem [shape: f32[1,32], index: 4, kind: input, shape index: {}]   ;;  %s2730_s5 = inlined_call_operand.vmem [shape: bf16[32,96], index: 5, kind: input, shape index: {}]   ;;  %s2731_s6 = inlined_call_operand.vmem [shape: f32[1,96], index: 6, kind: input, shape index: {}]   ;;  %s2732_s7 = inlined_call_operand.vmem [shape: bf16[32,32], index: 7, kind: input, shape index: {}]   ;;  %s2733_s8 = inlined_call_operand.vmem [shape: f32[1,32], index: 8, kind: input, shape index: {}]   ;;  %s2734_s9 = inlined_call_operand.vmem [shape: bf16[32,128], index: 9, kind: input, shape index: {}]   ;;  %s2735_s10 = inlined_call_operand.vmem [shape: f32[1,128], index: 10, kind: input, shape index: {}]   ;;  %s2736_s11 = inlined_call_operand.vmem [shape: bf16[128,32], index: 11, kind: input, shape index: {}]   ;;  %s2737_s12 = inlined_call_operand.vmem [shape: f32[1,32], index: 12, kind: input, shape index: {}]   ;;  %s2738_s13 = inlined_call_operand.hbm [shape: f32[2,8,32], index: 13, kind: output, shape index: {}]  }
   0x1   :  { %v46_v0 = vld [vmem:[%s2725_s0] sm:$0xff] }
   0x2   :  { %v51_v1 = vsel %vm50_vm0, %v46_v0, 0.0 }
   0x3   :  { %52 = vadd.xlane.f32.xlu0 %v51_v1 }
   0x4   :  { %18 = vsyncpa [#allocation4], 0  ;;  %v47_v2 = vld [vmem:[%s2725_s0 + $0x8] sm:$0xff]  ;;  %v2078_v4 = vmov 32.0   ;;  %v1969_v23 = vld [vmem:[%s2730_s5] sm:$0xff]  ;;  %s2080_s21 = smov 104  }
   0x5   :  { %v54_v3 = vsel %vm50_vm0, %v47_v2, 0.0  ;;  %2004 = vrcp.f32 %v2078_v4  ;;  %v1970_v21 = vld [vmem:[%s2730_s5 + $0x8] sm:$0xff]  ;;  %v1996_v42 = vld [vmem:[%s2726_s1] ss:$0 sm:$0xff]  ;;  %s2079_s1 = smov 96   ;;  %s2081_s22 = smov 120  }
   0x6   :  { %142 = vmatpush.bf16.msra.mxu0 %v1970_v21  ;;  %v1997_v47 = vld [vmem:[%s2727_s2] ss:$0 sm:$0xff]  ;;  %s2082_s2 = smov 112   ;;  %vm182_vm8 = vcmask 1047556   ;;  %vm518_vm9 = vcmask 64512   ;;  %vm661_vm10 = vcmask 1043456  }
   0x7   :  { %v1998_v52 = vld [vmem:[%s2731_s6] ss:$0 sm:$0xff]  ;;  %s2083_s6 = smov 64   ;;  %s2086_s23 = smov 8   ;;  %vm859_vm12 = vcmask 130048   ;;  %vm861_vm13 = vcmask 195584  }
   0x8   :  { %s2087_s24 = smov 16   ;;  %s2088_s25 = smov 24  }
   0xa   :  { %143 = vmatpush.bf16.msra.mxu0 %v1969_v23 }
   0xb   :  { %55 = vadd.xlane.f32.xlu0 %v54_v3  ;;  %v2005_v5 = vpop.eup %2004 }
   0xc   :  { %v58_v6 = vmul.f32 32.0, %v2005_v5  ;;  %vm62_vm1 = vweird.f32 %v2005_v5 }
   0xe   :  { %v59_v7 = vsub.f32 1.0, %v58_v6 }
  0x10   :  { %v60_v8 = vmul.f32 %v2005_v5, %v59_v7 }
  0x12   :  { %v61_v9 = vadd.f32 %v2005_v5, %v60_v8 }
  0x14   :  { %v2169_v10 = vsel %vm62_vm1, %v2005_v5, %v61_v9 }
  0x76   :  { %v53_v11 = vpop.xlane.xlu0 %52 }
  0x77   :  { %v64_v12 = vmul.f32 %v2169_v10, %v53_v11 }
  0x79   :  { %v66_v13 = vsub.f32 %v46_v0, %v64_v12  ;;  %v2084_v0 = vmov 1983009808  }
  0x7a   :  { %v173_v1 = vunpack.c.l.s4 %v2084_v0 }
  0x7b   :  { %v68_v14 = vmul.f32 %v66_v13, %v66_v13 }
  0x7c   :  { %v2210_v5 = vunpack.c.0.s8 %v173_v1 }
  0x7d   :  { %v70_v15 = vsel %vm50_vm0, %v68_v14, 0.0 }
  0x7e   :  { %71 = vadd.xlane.f32.xlu1 %v70_v15  ;;  %v56_v16 = vpop.xlane.xlu0 %55  ;;  %v2085_v15 = vmov 1934713408  }
  0x7f   :  { %v65_v17 = vmul.f32 %v2169_v10, %v56_v16  ;;  %v187_v16 = vunpack.c.l.s4 %v2085_v15 }
  0x81   :  { %v67_v18 = vsub.f32 %v47_v2, %v65_v17  ;;  %v2216_v21 = vunpack.c.0.s8 %v187_v16 }
  0x83   :  { %v69_v19 = vmul.f32 %v67_v18, %v67_v18 }
  0x85   :  { %v73_v20 = vsel %vm50_vm0, %v69_v19, 0.0 }
  0x86   :  { %74 = vadd.xlane.f32.xlu1 %v73_v20 }
  0xf1   :  { %v72_v22 = vpop.xlane.xlu1 %71 }
  0xf2   :  { %v76_v24 = vmul.f32 %v72_v22, %v2169_v10 }
  0xf4   :  { %v78_v25 = vadd.f32 1e-05, %v76_v24 }
  0xf6   :  { %2006 = vrsqrt.f32 %v78_v25  ;;  %vm86_vm3 = vweird.f32 %v78_v25 }
  0xf9   :  { %v75_v26 = vpop.xlane.xlu1 %74 }
  0xfa   :  { %v77_v27 = vmul.f32 %v75_v26, %v2169_v10 }
  0xfc   :  { %v2007_v28 = vpop.eup %2006  ;;  %v79_v29 = vadd.f32 1e-05, %v77_v27 }
  0xfd   :  { %v81_v30 = vmul.f32 %v2007_v28, %v78_v25  ;;  %vm87_vm2 = vweird.f32 %v2007_v28 }
  0xfe   :  { %2008 = vrsqrt.f32 %v79_v29  ;;  %vm88_vm4 = vmor %vm86_vm3, %vm87_vm2  ;;  %vm96_vm6 = vweird.f32 %v79_v29 }
  0xff   :  { %v82_v31 = vmul.f32 %v2007_v28, %v81_v30 }
 0x101   :  { %v83_v32 = vmul.f32 0.5, %v82_v31 }
 0x103   :  { %v84_v33 = vsub.f32 1.5, %v83_v32 }
 0x104   :  { %v2009_v34 = vpop.eup %2008 }
 0x105   :  { %v85_v35 = vmul.f32 %v2007_v28, %v84_v33  ;;  %v91_v36 = vmul.f32 %v2009_v34, %v79_v29  ;;  %vm97_vm5 = vweird.f32 %v2009_v34 }
 0x106   :  { %vm98_vm7 = vmor %vm96_vm6, %vm97_vm5 }
 0x107   :  { %v92_v37 = vmul.f32 %v2009_v34, %v91_v36  ;;  %v89_v38 = vsel %vm88_vm4, %v2007_v28, %v85_v35 }
 0x108   :  { %v100_v41 = vmul.f32 %v89_v38, %v66_v13 }
 0x109   :  { %v93_v39 = vmul.f32 0.5, %v92_v37 }
 0x10a   :  { %v105_v46 = vmul.f32 %v1996_v42, %v100_v41 }
 0x10b   :  { %v94_v40 = vsub.f32 1.5, %v93_v39 }
 0x10c   :  { %v110_v49 = vadd.f32 %v1997_v47, %v105_v46 }
 0x10d   :  { %v95_v43 = vmul.f32 %v2009_v34, %v94_v40 }
 0x10f   :  { %v99_v44 = vsel %vm98_vm7, %v2009_v34, %v95_v43 }
 0x110   :  { %v101_v45 = vmul.f32 %v99_v44, %v67_v18 }
 0x112   :  { %v106_v48 = vmul.f32 %v1996_v42, %v101_v45 }
 0x114   :  { %v111_v50 = vadd.f32 %v1997_v47, %v106_v48 }
 0x116   :  { %v112_v51 = vpack.c.bf16 %v111_v50, %v110_v49 }
 0x118   :  { %1900 = vmatmul.msk.bf16.vlgmr.msra.gmra.mxu0 %vm50_vm0, %v112_v51 }
 0x195   :  { %v145_v53 = vpop.f32.mrf.mxu0 }
 0x196   :  { %v146_v54 = vadd.f32 %v1998_v52, %v145_v53 }
 0x198   :  { %v150_v55 = vpack.c.bf16 %v146_v54, %v146_v54 }
 0x19a   :  { %274 = vrot.lane.b32.xlu1 %v150_v55, %s2079_s1  ;;  %157 = vrot.lane.b32.xlu0 %v150_v55, %s2080_s21  ;;  %v162_v3 = vshrl.u32 %v150_v55, 16 }
 0x19b   :  { %153 = vrot.lane.b32.xlu2 %v150_v55, %s2081_s22 }
 0x19d   :  { %v147_v56 = vpop.f32.mrf.mxu0 }
 0x19e   :  { %v148_v57 = vadd.f32 %v1998_v52, %v147_v56 }
 0x1a0   :  { %v2194_v58 = vpack.c.bf16 %v148_v57, %v148_v57 }
 0x1a2   :  { %865 = vrot.lane.b32.xlu1 %v2194_v58, %s2081_s22 }
 0x1a3   :  { %155 = vrot.lane.b32.xlu2 %v150_v55, %s2082_s2 }
 0x1aa   :  { %867 = vrot.lane.b32.xlu1 %v2194_v58, %s2082_s2 }
 0x1b2   :  { %869 = vrot.lane.b32.xlu1 %v2194_v58, %s2080_s21 }
 0x1f5   :  { %v154_v59 = vpop.permute.xlu2 %153 }
 0x1f6   :  { %398 = vrot.lane.b32.xlu0 %v154_v59, %s2083_s6  ;;  %276 = vrot.lane.b32.xlu2 %v154_v59, %s2079_s1  ;;  %v163_v2 = vshrl.u32 %v154_v59, 16  ;;  %v161_v6 = vpack.i.b16 %v154_v59, %v150_v55 }
 0x1f8   :  { %v164_v7 = vpack.i.b16 %v163_v2, %v162_v3  ;;  %v175_v12 = vperm.slane %v161_v6, %v2210_v5 }
 0x1fa   :  { %v202_v14 = vperm.slane %v164_v7, %v2210_v5  ;;  %v184_v19 = vrot.slane %v175_v12, 4 }
 0x1fc   :  { %v210_v20 = vrot.slane %v202_v14, 4 }
 0x1fd   :  { %v156_v60 = vpop.permute.xlu2 %155 }
 0x1fe   :  { %278 = vrot.lane.b32.xlu2 %v156_v60, %s2079_s1  ;;  %v168_v8 = vshrl.u32 %v156_v60, 16 }
 0x20c   :  { %v158_v61 = vpop.permute.xlu0 %157  ;;  %v275_v62 = vpop.permute.xlu1 %274 }
 0x20d   :  { %402 = vrot.lane.b32.xlu0 %v158_v61, %s2083_s6  ;;  %280 = vrot.lane.b32.xlu2 %v158_v61, %s2079_s1  ;;  %v169_v4 = vshrl.u32 %v158_v61, 16  ;;  %v167_v9 = vpack.i.b16 %v158_v61, %v156_v60  ;;  %v285_v32 = vshrl.u32 %v275_v62, 16 }
 0x20f   :  { %v170_v11 = vpack.i.b16 %v169_v4, %v168_v8  ;;  %v180_v17 = vperm.slane %v167_v9, %v2210_v5 }
 0x211   :  { %v207_v18 = vperm.slane %v170_v11, %v2210_v5  ;;  %v181_v22 = vrot.slane %v180_v17, 4  ;;  %v185_v23 = vsel %vm182_vm8, %v180_v17, %v184_v19 }
 0x212   :  { %v193_v26 = vperm.slane %v185_v23, %v2216_v21 }
 0x213   :  { %v208_v24 = vrot.slane %v207_v18, 4  ;;  %v211_v25 = vsel %vm182_vm8, %v207_v18, %v210_v20  ;;  %v183_v27 = vsel %vm182_vm8, %v181_v22, %v175_v12 }
 0x214   :  { %v2206_v63 = vpop.permute.xlu1 %865  ;;  %v219_v28 = vperm.slane %v211_v25, %v2216_v21  ;;  %v189_v33 = vperm.slane %v183_v27, %v2216_v21  ;;  %v196_v34 = vrot.slane %v193_v26, 4 }
 0x215   :  { %396 = vrot.lane.b32.xlu2 %v150_v55, %s2083_s6  ;;  %v209_v30 = vsel %vm182_vm8, %v208_v24, %v202_v14 }
 0x216   :  { %v215_v36 = vperm.slane %v209_v30, %v2216_v21  ;;  %v222_v37 = vrot.slane %v219_v28, 4  ;;  %v194_v39 = vrot.slane %v189_v33, 4  ;;  %v197_v40 = vsel %vm182_vm8, 0, %v196_v34 }
 0x217   :  { %v229_v49 = vrot.slane %v197_v40, 4  ;;  %v224_v22 = vsel %vm182_vm8, %v196_v34, %v189_v33 }
 0x218   :  { %v220_v42 = vrot.slane %v215_v36, 4  ;;  %v223_v43 = vsel %vm182_vm8, 0, %v222_v37  ;;  %v195_v53 = vsel %vm182_vm8, 0, %v194_v39  ;;  %v243_v30 = vsel %vm182_vm8, %v222_v37, %v215_v36 }
 0x219   :  { %v248_v54 = vrot.slane %v223_v43, 4  ;;  %v247_v43 = vperm.slane %v243_v30, %v2210_v5 }
 0x21a   :  { %v221_v55 = vsel %vm182_vm8, 0, %v220_v42 }
 0x21b   :  { %v249_v7 = vsel %vm182_vm8, %v248_v54, %v221_v55 }
 0x21c   :  { %v253_v17 = vperm.slane %v249_v7, %v2210_v5 }
 0x21d   :  { %400 = vrot.lane.b32.xlu2 %v156_v60, %s2083_s6 }
 0x21e   :  { %v254_v33 = vrot.slane %v253_v17, 4 }
 0x225   :  { %987 = vrot.lane.b32.xlu2 %v2206_v63, %s2079_s1 }
 0x250   :  { %v277_v13 = vpop.permute.xlu2 %276 }
 0x251   :  { %v286_v31 = vshrl.u32 %v277_v13, 16  ;;  %v284_v35 = vpack.i.b16 %v277_v13, %v275_v62  ;;  %v230_v62 = vsel %vm182_vm8, %v229_v49, %v195_v53 }
 0x252   :  { %v234_v9 = vperm.slane %v230_v62, %v2210_v5 }
 0x253   :  { %v287_v38 = vpack.i.b16 %v286_v31, %v285_v32  ;;  %v298_v41 = vperm.slane %v284_v35, %v2210_v5  ;;  %v228_v35 = vperm.slane %v224_v22, %v2210_v5 }
 0x254   :  { %v235_v26 = vrot.slane %v234_v9, 4 }
 0x255   :  { %v324_v45 = vperm.slane %v287_v38, %v2210_v5  ;;  %v306_v50 = vrot.slane %v298_v41, 4 }
 0x256   :  { %v236_v42 = vsel %vm182_vm8, %v235_v26, %v228_v35 }
 0x257   :  { %v332_v56 = vrot.slane %v324_v45, 4 }
 0x258   :  { %v279_v29 = vpop.permute.xlu2 %278 }
 0x259   :  { %v291_v46 = vshrl.u32 %v279_v29, 16 }
 0x267   :  { %v281_v44 = vpop.permute.xlu2 %280 }
 0x268   :  { %v290_v47 = vpack.i.b16 %v281_v44, %v279_v29  ;;  %v292_v48 = vshrl.u32 %v281_v44, 16  ;;  %v399_v27 = vpop.permute.xlu0 %398 }
 0x26a   :  { %v293_v51 = vpack.i.b16 %v292_v48, %v291_v46  ;;  %v303_v52 = vperm.slane %v290_v47, %v2210_v5  ;;  %v255_v47 = vsel %vm182_vm8, %v254_v33, %v247_v43 }
 0x26b   :  { %v259_v55 = vperm.slane %v255_v47, %v2216_v21 }
 0x26c   :  { %v304_v57 = vrot.slane %v303_v52, 4  ;;  %v307_v59 = vsel %vm182_vm8, %v303_v52, %v306_v50  ;;  %v329_v60 = vperm.slane %v293_v51, %v2210_v5  ;;  %v240_v50 = vperm.slane %v236_v42, %v2216_v21 }
 0x26d   :  { %v315_v61 = vperm.slane %v307_v59, %v2216_v21 }
 0x26e   :  { %v305_v0 = vsel %vm182_vm8, %v304_v57, %v298_v41  ;;  %v330_v1 = vrot.slane %v329_v60, 4  ;;  %v333_v2 = vsel %vm182_vm8, %v329_v60, %v332_v56  ;;  %v408_v41 = vshrl.u32 %v399_v27, 16 }
 0x26f   :  { %v311_v3 = vperm.slane %v305_v0, %v2216_v21  ;;  %v318_v4 = vrot.slane %v315_v61, 4  ;;  %v341_v6 = vperm.slane %v333_v2, %v2216_v21  ;;  %v397_v16 = vpop.permute.xlu2 %396 }
 0x270   :  { %v331_v8 = vsel %vm182_vm8, %v330_v1, %v324_v45  ;;  %v407_v34 = vshrl.u32 %v397_v16, 16  ;;  %v406_v44 = vpack.i.b16 %v399_v27, %v397_v16  ;;  %v241_v1 = vrot.slane %v240_v50, 4 }
 0x271   :  { %v316_v11 = vrot.slane %v311_v3, 4  ;;  %v319_v12 = vsel %vm182_vm8, 0, %v318_v4  ;;  %v337_v13 = vperm.slane %v331_v8, %v2216_v21  ;;  %v344_v14 = vrot.slane %v341_v6, 4 }
 0x272   :  { %v351_v15 = vrot.slane %v319_v12, 4  ;;  %v346_v24 = vsel %vm182_vm8, %v318_v4, %v311_v3  ;;  %v409_v48 = vpack.i.b16 %v408_v41, %v407_v34  ;;  %v420_v54 = vperm.slane %v406_v44, %v2210_v5 }
 0x273   :  { %v317_v18 = vsel %vm182_vm8, 0, %v316_v11  ;;  %v342_v19 = vrot.slane %v337_v13, 4  ;;  %v345_v20 = vsel %vm182_vm8, 0, %v344_v14  ;;  %v365_v31 = vsel %vm182_vm8, %v344_v14, %v337_v13 }
 0x274   :  { %v370_v23 = vrot.slane %v345_v20, 4  ;;  %v352_v25 = vsel %vm182_vm8, %v351_v15, %v317_v18  ;;  %v350_v38 = vperm.slane %v346_v24, %v2210_v5  ;;  %v369_v37 = vperm.slane %v365_v31, %v2210_v5 }
 0x275   :  { %v343_v28 = vsel %vm182_vm8, 0, %v342_v19  ;;  %v356_v29 = vperm.slane %v352_v25, %v2210_v5  ;;  %v446_v60 = vperm.slane %v409_v48, %v2210_v5  ;;  %v428_v7 = vrot.slane %v420_v54, 4 }
 0x276   :  { %v371_v32 = vsel %vm182_vm8, %v370_v23, %v343_v28  ;;  %v260_v11 = vrot.slane %v259_v55, 4  ;;  %v266_v19 = vshrl.u32 %v259_v55, 16  ;;  %v265_v27 = vshrl.u32 %v240_v50, 16 }
 0x277   :  { %v357_v39 = vrot.slane %v356_v29, 4  ;;  %v375_v40 = vperm.slane %v371_v32, %v2210_v5  ;;  %v401_v51 = vpop.permute.xlu2 %400  ;;  %v454_v16 = vrot.slane %v446_v60, 4  ;;  %v264_v32 = vpack.i.b16 %v259_v55, %v240_v50 }
 0x278   :  { %v413_v61 = vshrl.u32 %v401_v51, 16  ;;  %v261_v28 = vsel %vm182_vm8, 0, %v260_v11  ;;  %v242_v41 = vsel %vm182_vm8, 0, %v241_v1 }
 0x279   :  { %v358_v36 = vsel %vm182_vm8, %v357_v39, %v350_v38  ;;  %v376_v45 = vrot.slane %v375_v40, 4  ;;  %v267_v40 = vpack.i.b16 %v266_v19, %v265_v27  ;;  %v272_v42 = vshrl.u32 %v261_v28, 16 }
 0x27a   :  { %v362_v46 = vperm.slane %v358_v36, %v2216_v21  ;;  %v271_v50 = vshrl.u32 %v242_v41, 16 }
 0x27b   :  { %v377_v49 = vsel %vm182_vm8, %v376_v45, %v369_v37 }
 0x27c   :  { %v381_v52 = vperm.slane %v377_v49, %v2216_v21  ;;  %v363_v53 = vrot.slane %v362_v46, 4  ;;  %v387_v0 = vshrl.u32 %v362_v46, 16 }
 0x27e   :  { %v386_v56 = vpack.i.b16 %v381_v52, %v362_v46  ;;  %v388_v57 = vshrl.u32 %v381_v52, 16  ;;  %v382_v59 = vrot.slane %v381_v52, 4  ;;  %v364_v6 = vsel %vm182_vm8, 0, %v363_v53 }
 0x27f   :  { %v403_v62 = vpop.permute.xlu0 %402  ;;  %v393_v18 = vshrl.u32 %v364_v6, 16  ;;  %v270_v46 = vpack.i.b16 %v261_v28, %v242_v41 }
 0x280   :  { %v412_v2 = vpack.i.b16 %v403_v62, %v401_v51  ;;  %v414_v3 = vshrl.u32 %v403_v62, 16  ;;  %v523_v4 = vsel %vm518_vm9, %v386_v56, 0  ;;  %v389_v8 = vpack.i.b16 %v388_v57, %v387_v0 }
 0x281   :  { %532 = vmatpush.bf16.xpose.msra.mxu1 %v523_v4  ;;  %v383_v9 = vsel %vm182_vm8, 0, %v382_v59 }
 0x282   :  { %v415_v12 = vpack.i.b16 %v414_v3, %v413_v61  ;;  %v425_v13 = vperm.slane %v412_v2, %v2210_v5  ;;  %v392_v14 = vpack.i.b16 %v383_v9, %v364_v6  ;;  %v394_v15 = vshrl.u32 %v383_v9, 16 }
 0x283   :  { %v542_v17 = vsel %vm518_vm9, %v389_v8, 0 }
 0x284   :  { %v426_v20 = vrot.slane %v425_v13, 4  ;;  %v429_v22 = vsel %vm182_vm8, %v425_v13, %v428_v7  ;;  %v451_v23 = vperm.slane %v415_v12, %v2210_v5  ;;  %551 = vmatpush.bf16.xpose.msra.mxu2 %v542_v17  ;;  %v561_v24 = vsel %vm518_vm9, %v392_v14, 0 }
 0x285   :  { %v437_v25 = vperm.slane %v429_v22, %v2216_v21  ;;  %570 = vmatpush.bf16.xpose.msra.mxu3 %v561_v24  ;;  %v395_v26 = vpack.i.b16 %v394_v15, %v393_v18 }
 0x286   :  { %v427_v29 = vsel %vm182_vm8, %v426_v20, %v420_v54  ;;  %v452_v30 = vrot.slane %v451_v23, 4  ;;  %v455_v31 = vsel %vm182_vm8, %v451_v23, %v454_v16  ;;  %v273_v54 = vpack.i.b16 %v272_v42, %v271_v50 }
 0x287   :  { %v433_v35 = vperm.slane %v427_v29, %v2216_v21  ;;  %v440_v33 = vrot.slane %v437_v25, 4  ;;  %v463_v34 = vperm.slane %v455_v31, %v2216_v21  ;;  %v580_v38 = vsel %vm518_vm9, %v395_v26, 0 }
 0x288   :  { %v453_v39 = vsel %vm182_vm8, %v452_v30, %v446_v60  ;;  %589 = vmatpush.bf16.xpose.msrb.mxu0 %v580_v38  ;;  %1901 = vmatmul.msk.bf16.vlgmr.msra.gmra.mxu1 %vm518_vm9, %v264_v32  ;;  %v599_v25 = vlaneseq }
 0x289   :  { %v438_v43 = vrot.slane %v433_v35, 4  ;;  %v441_v44 = vsel %vm182_vm8, 0, %v440_v33  ;;  %v459_v36 = vperm.slane %v453_v39, %v2216_v21  ;;  %v466_v37 = vrot.slane %v463_v34, 4 }
 0x28a   :  { %v473_v45 = vrot.slane %v441_v44, 4  ;;  %v468_v52 = vsel %vm182_vm8, %v440_v33, %v433_v35  ;;  %v600_v26 = vshrl.u32 %v599_v25, 7  ;;  %v602_v27 = vand.u32 127, %v599_v25 }
 0x28b   :  { %v439_v47 = vsel %vm182_vm8, 0, %v438_v43  ;;  %v464_v48 = vrot.slane %v459_v36, 4  ;;  %v467_v49 = vsel %vm182_vm8, 0, %v466_v37  ;;  %1902 = vmatmul.msk.bf16.vlgmr.msra.gmra.mxu2 %vm518_vm9, %v267_v40  ;;  %v487_v57 = vsel %vm182_vm8, %v466_v37, %v459_v36 }
 0x28c   :  { %v492_v51 = vrot.slane %v467_v49, 4  ;;  %1903 = vmatmul.msk.bf16.vlgmr.msra.gmra.mxu3 %vm518_vm9, %v270_v46  ;;  %v474_v53 = vsel %vm182_vm8, %v473_v45, %v439_v47  ;;  %v472_v60 = vperm.slane %v468_v52, %v2210_v5  ;;  %v491_v1 = vperm.slane %v487_v57, %v2210_v5  ;;  %v2332_v49 = vpop.permute.xlu1 %867  ;;  %v988_v52 = vpop.permute.xlu2 %987 }
 0x28d   :  { %v465_v55 = vsel %vm182_vm8, 0, %v464_v48  ;;  %v478_v56 = vperm.slane %v474_v53, %v2210_v5  ;;  %vm2316_vm11 = vcmp.gt.s32.totalorder %v602_v27, %v600_v26 }
 0x28e   :  { %v493_v59 = vsel %vm182_vm8, %v492_v51, %v465_v55 }
 0x28f   :  { %1904 = vmatmul.msk.bf16.vlgmr.msrb.gmra.mxu0 %vm518_vm9, %v273_v54  ;;  %v479_v61 = vrot.slane %v478_v56, 4  ;;  %v497_v62 = vperm.slane %v493_v59, %v2210_v5 }
 0x291   :  { %v480_v0 = vsel %vm182_vm8, %v479_v61, %v472_v60  ;;  %v498_v2 = vrot.slane %v497_v62, 4 }
 0x292   :  { %v484_v3 = vperm.slane %v480_v0, %v2216_v21 }
 0x293   :  { %v499_v4 = vsel %vm182_vm8, %v498_v2, %v491_v1 }
 0x294   :  { %v503_v6 = vperm.slane %v499_v4, %v2216_v21  ;;  %v485_v7 = vrot.slane %v484_v3, 4  ;;  %v509_v8 = vshrl.u32 %v484_v3, 16  ;;  %v2336_v50 = vpop.permute.xlu1 %869 }
 0x296   :  { %v508_v9 = vpack.i.b16 %v503_v6, %v484_v3  ;;  %v510_v11 = vshrl.u32 %v503_v6, 16  ;;  %v486_v12 = vsel %vm182_vm8, 0, %v485_v7  ;;  %v504_v13 = vrot.slane %v503_v6, 4 }
 0x297   :  { %v515_v18 = vshrl.u32 %v486_v12, 16 }
 0x298   :  { %v663_v14 = vsel %vm661_vm10, %v508_v9, 0  ;;  %v511_v15 = vpack.i.b16 %v510_v11, %v509_v8  ;;  %v505_v16 = vsel %vm182_vm8, 0, %v504_v13 }
 0x299   :  { %672 = vmatpush.bf16.msrb.mxu1 %v663_v14  ;;  %v514_v17 = vpack.i.b16 %v505_v16, %v486_v12  ;;  %v516_v19 = vshrl.u32 %v505_v16, 16  ;;  %v997_v12 = vshrl.u32 %v988_v52, 16 }
 0x29a   :  { %v682_v20 = vsel %vm661_vm10, %v511_v15, 0 }
 0x29b   :  { %691 = vmatpush.bf16.msrb.mxu2 %v682_v20  ;;  %v701_v22 = vsel %vm661_vm10, %v514_v17, 0  ;;  %v517_v23 = vpack.i.b16 %v516_v19, %v515_v18 }
 0x29c   :  { %710 = vmatpush.bf16.msrb.mxu3 %v701_v22 }
 0x29d   :  { %v720_v24 = vsel %vm661_vm10, %v517_v23, 0 }
 0x29e   :  { %729 = vmatpush.bf16.msra.mxu0 %v720_v24 }
 0x305   :  { %v534_v28 = vpop.f32.mrf.mxu1 }
 0x306   :  { %v595_v30 = vmul.f32 0.35355338, %v534_v28 }
 0x308   :  { %v606_v31 = vsel %vm2316_vm11, -1e+30, %v595_v30 }
 0x309   :  { %v610_v32 = vsel %vm518_vm9, %v606_v31, -inf }
 0x30a   :  { %611 = vmax.xlane.f32.xlu1 %v610_v32 }
 0x30c   :  { %v591_v35 = vpop.f32.mrf.mxu0 }
 0x30d   :  { %v598_v33 = vmul.f32 0.35355338, %v591_v35  ;;  %v536_v34 = vpop.f32.mrf.mxu1 }
 0x30e   :  { %v553_v38 = vpop.f32.mrf.mxu2 }
 0x30f   :  { %v596_v39 = vmul.f32 0.35355338, %v553_v38  ;;  %v572_v40 = vpop.f32.mrf.mxu3  ;;  %v609_v41 = vsel %vm2316_vm11, -1e+30, %v598_v33 }
 0x310   :  { %v619_v42 = vsel %vm518_vm9, %v609_v41, -inf  ;;  %v597_v43 = vmul.f32 0.35355338, %v572_v40 }
 0x311   :  { %620 = vmax.xlane.f32.xlu0 %v619_v42  ;;  %v607_v44 = vsel %vm2316_vm11, -1e+30, %v596_v39 }
 0x312   :  { %v613_v36 = vsel %vm518_vm9, %v607_v44, -inf  ;;  %v608_v45 = vsel %vm2316_vm11, -1e+30, %v597_v43 }
 0x313   :  { %614 = vmax.xlane.f32.xlu2 %v613_v36  ;;  %v616_v48 = vsel %vm518_vm9, %v608_v45, -inf }
 0x314   :  { %v593_v37 = vpop.f32.mrf.mxu0 }
 0x316   :  { %v555_v46 = vpop.f32.mrf.mxu2 }
 0x317   :  { %v574_v47 = vpop.f32.mrf.mxu3 }
 0x319   :  { %617 = vmax.xlane.f32.xlu0 %v616_v48 }
 0x323   :  { %985 = vrot.lane.b32.xlu1 %v2194_v58, %s2079_s1 }
 0x32b   :  { %991 = vrot.lane.b32.xlu2 %v2336_v50, %s2079_s1 }
 0x32d   :  { %989 = vrot.lane.b32.xlu0 %v2332_v49, %s2079_s1 }
 0x37d   :  { %v612_v51 = vpop.xlane.xlu1 %611 }
 0x37e   :  { %v622_v53 = vsub.f32 %v606_v31, %v612_v51 }
 0x380   :  { %v626_v54 = vmul.f32 1.442695, %v622_v53 }
 0x382   :  { %2010 = vpow2.f32 %v626_v54 }
 0x384   :  { %v621_v55 = vpop.xlane.xlu0 %620 }
 0x385   :  { %v625_v1 = vsub.f32 %v609_v41, %v621_v55 }
 0x386   :  { %v615_v56 = vpop.xlane.xlu2 %614 }
 0x387   :  { %v623_v57 = vsub.f32 %v607_v44, %v615_v56  ;;  %v632_v6 = vmul.f32 1.442695, %v625_v1 }
 0x388   :  { %v2342_v59 = vpop.eup %2010 }
 0x389   :  { %v628_v60 = vmul.f32 1.442695, %v623_v57  ;;  %v634_v61 = vsel %vm518_vm9, %v2342_v59, 0.0 }
 0x38a   :  { %635 = vadd.xlane.f32.xlu1 %v634_v61 }
 0x38b   :  { %2012 = vpow2.f32 %v628_v60 }
 0x38c   :  { %v618_v62 = vpop.xlane.xlu0 %617 }
 0x38d   :  { %v624_v0 = vsub.f32 %v608_v45, %v618_v62 }
 0x38e   :  { %v992_v14 = vpop.permute.xlu2 %991 }
 0x38f   :  { %v630_v2 = vmul.f32 1.442695, %v624_v0  ;;  %v1003_v18 = vshrl.u32 %v992_v14, 16 }
 0x391   :  { %v2346_v3 = vpop.eup %2012  ;;  %2014 = vpow2.f32 %v630_v2 }
 0x392   :  { %v637_v4 = vsel %vm518_vm9, %v2346_v3, 0.0  ;;  %2016 = vpow2.f32 %v632_v6 }
 0x393   :  { %638 = vadd.xlane.f32.xlu2 %v637_v4 }
 0x395   :  { %v986_v7 = vpop.permute.xlu1 %985 }
 0x396   :  { %v996_v9 = vshrl.u32 %v986_v7, 16  ;;  %v995_v13 = vpack.i.b16 %v988_v52, %v986_v7 }
 0x397   :  { %v2350_v8 = vpop.eup %2014 }
 0x398   :  { %v640_v11 = vsel %vm518_vm9, %v2350_v8, 0.0  ;;  %v998_v15 = vpack.i.b16 %v997_v12, %v996_v9  ;;  %v2354_v16 = vpop.eup %2016  ;;  %v1009_v17 = vperm.slane %v995_v13, %v2210_v5 }
 0x399   :  { %641 = vadd.xlane.f32.xlu0 %v640_v11  ;;  %v643_v24 = vsel %vm518_vm9, %v2354_v16, 0.0 }
 0x39a   :  { %v1035_v20 = vperm.slane %v998_v15, %v2210_v5  ;;  %v1017_v25 = vrot.slane %v1009_v17, 4 }
 0x39c   :  { %v1043_v28 = vrot.slane %v1035_v20, 4 }
 0x39f   :  { %v990_v19 = vpop.permute.xlu0 %989 }
 0x3a0   :  { %v1001_v22 = vpack.i.b16 %v992_v14, %v990_v19  ;;  %v1002_v23 = vshrl.u32 %v990_v19, 16 }
 0x3a1   :  { %644 = vadd.xlane.f32.xlu0 %v643_v24 }
 0x3a2   :  { %v1004_v26 = vpack.i.b16 %v1003_v18, %v1002_v23  ;;  %v1014_v27 = vperm.slane %v1001_v22, %v2210_v5 }
 0x3a4   :  { %v1015_v30 = vrot.slane %v1014_v27, 4  ;;  %v1018_v31 = vsel %vm182_vm8, %v1014_v27, %v1017_v25  ;;  %v1040_v32 = vperm.slane %v1004_v26, %v2210_v5 }
 0x3a5   :  { %v1026_v35 = vperm.slane %v1018_v31, %v2216_v21  ;;  %v881_v31 = vshrl.u32 %v2336_v50, 16 }
 0x3a6   :  { %v1016_v33 = vsel %vm182_vm8, %v1015_v30, %v1009_v17  ;;  %v1041_v34 = vrot.slane %v1040_v32, 4  ;;  %v1044_v38 = vsel %vm182_vm8, %v1040_v32, %v1043_v28  ;;  %v875_v28 = vshrl.u32 %v2206_v63, 16 }
 0x3a7   :  { %v1022_v39 = vperm.slane %v1016_v33, %v2216_v21  ;;  %v1029_v40 = vrot.slane %v1026_v35, 4  ;;  %v1052_v41 = vperm.slane %v1044_v38, %v2216_v21  ;;  %v874_v30 = vshrl.u32 %v2194_v58, 16 }
 0x3a8   :  { %v1042_v42 = vsel %vm182_vm8, %v1041_v34, %v1035_v20  ;;  %v880_v35 = vshrl.u32 %v2332_v49, 16  ;;  %v873_v33 = vpack.i.b16 %v2206_v63, %v2194_v58 }
 0x3a9   :  { %v1027_v43 = vrot.slane %v1022_v39, 4  ;;  %v1030_v44 = vsel %vm182_vm8, 0, %v1029_v40  ;;  %v1048_v36 = vperm.slane %v1042_v42, %v2216_v21  ;;  %v1055_v37 = vrot.slane %v1052_v41, 4 }
 0x3aa   :  { %v1062_v45 = vrot.slane %v1030_v44, 4  ;;  %v1057_v51 = vsel %vm182_vm8, %v1029_v40, %v1022_v39  ;;  %v876_v32 = vpack.i.b16 %v875_v28, %v874_v30  ;;  %v882_v34 = vpack.i.b16 %v881_v31, %v880_v35 }
 0x3ab   :  { %v1028_v46 = vsel %vm182_vm8, 0, %v1027_v43  ;;  %v1053_v47 = vrot.slane %v1048_v36, 4  ;;  %v1056_v48 = vsel %vm182_vm8, 0, %v1055_v37  ;;  %v1076_v56 = vsel %vm182_vm8, %v1055_v37, %v1048_v36 }
 0x3ac   :  { %v1063_v52 = vsel %vm182_vm8, %v1062_v45, %v1028_v46  ;;  %v1081_v53 = vrot.slane %v1056_v48, 4  ;;  %v1061_v60 = vperm.slane %v1057_v51, %v2210_v5  ;;  %v1080_v1 = vperm.slane %v1076_v56, %v2210_v5 }
 0x3ad   :  { %v1054_v54 = vsel %vm182_vm8, 0, %v1053_v47  ;;  %v1067_v55 = vperm.slane %v1063_v52, %v2210_v5  ;;  %v913_v38 = vperm.slane %v876_v32, %v2210_v5  ;;  %v879_v39 = vpack.i.b16 %v2336_v50, %v2332_v49 }
 0x3ae   :  { %v1082_v57 = vsel %vm182_vm8, %v1081_v53, %v1054_v54  ;;  %v887_v40 = vperm.slane %v873_v33, %v2210_v5  ;;  %v918_v41 = vperm.slane %v882_v34, %v2210_v5 }
 0x3af   :  { %v1068_v61 = vrot.slane %v1067_v55, 4  ;;  %v1086_v62 = vperm.slane %v1082_v57, %v2210_v5  ;;  %v921_v42 = vrot.slane %v913_v38, 4  ;;  %v892_v43 = vperm.slane %v879_v39, %v2210_v5 }
 0x3b0   :  { %v895_v44 = vrot.slane %v887_v40, 4  ;;  %v919_v36 = vrot.slane %v918_v41, 4 }
 0x3b1   :  { %v1069_v0 = vsel %vm182_vm8, %v1068_v61, %v1061_v60  ;;  %v1087_v2 = vrot.slane %v1086_v62, 4  ;;  %v922_v37 = vsel %vm182_vm8, %v918_v41, %v921_v42  ;;  %v893_v45 = vrot.slane %v892_v43, 4 }
 0x3b2   :  { %v1073_v4 = vperm.slane %v1069_v0, %v2216_v21  ;;  %v930_v46 = vperm.slane %v922_v37, %v2216_v21  ;;  %v920_v47 = vsel %vm182_vm8, %v919_v36, %v913_v38 }
 0x3b3   :  { %v1088_v6 = vsel %vm182_vm8, %v1087_v2, %v1080_v1  ;;  %v894_v51 = vsel %vm182_vm8, %v893_v45, %v887_v40  ;;  %v926_v52 = vperm.slane %v920_v47, %v2216_v21 }
 0x3b4   :  { %v1092_v7 = vperm.slane %v1088_v6, %v2216_v21  ;;  %v1074_v9 = vrot.slane %v1073_v4, 4  ;;  %v1098_v11 = vshrl.u32 %v1073_v4, 16  ;;  %v933_v53 = vrot.slane %v930_v46, 4 }
 0x3b5   :  { %1107 = vrot.lane.b32.xlu0 %v2194_v58, %s2083_s6  ;;  %v896_v58 = vsel %vm182_vm8, %v892_v43, %v895_v44  ;;  %v900_v54 = vperm.slane %v894_v51, %v2216_v21  ;;  %v931_v57 = vrot.slane %v926_v52, 4 }
 0x3b6   :  { %v1097_v12 = vpack.i.b16 %v1092_v7, %v1073_v4  ;;  %v1099_v13 = vshrl.u32 %v1092_v7, 16  ;;  %v1075_v14 = vsel %vm182_vm8, 0, %v1074_v9  ;;  %v1093_v15 = vrot.slane %v1092_v7, 4 }
 0x3b7   :  { %v1104_v22 = vshrl.u32 %v1075_v14, 16  ;;  %v904_v48 = vperm.slane %v896_v58, %v2216_v21  ;;  %v934_v60 = vsel %vm182_vm8, 0, %v933_v53  ;;  %v905_v61 = vrot.slane %v900_v54, 4 }
 0x3b8   :  { %v1233_v17 = vsel %vm518_vm9, %v1097_v12, 0  ;;  %v1100_v18 = vpack.i.b16 %v1099_v13, %v1098_v11  ;;  %v1094_v19 = vsel %vm182_vm8, 0, %v1093_v15  ;;  %v959_v0 = vrot.slane %v934_v60, 4 }
 0x3b9   :  { %1242 = vmatpush.bf16.xpose.msra.mxu1 %v1233_v17  ;;  %v1103_v20 = vpack.i.b16 %v1094_v19, %v1075_v14  ;;  %v1105_v23 = vshrl.u32 %v1094_v19, 16  ;;  %v907_v55 = vrot.slane %v904_v48, 4  ;;  %v932_v1 = vsel %vm182_vm8, 0, %v931_v57 }
 0x3ba   :  { %v1252_v24 = vsel %vm518_vm9, %v1100_v18, 0  ;;  %v906_v6 = vsel %vm182_vm8, 0, %v905_v61  ;;  %v960_v7 = vsel %vm182_vm8, %v959_v0, %v932_v1  ;;  %v954_v17 = vsel %vm182_vm8, %v933_v53, %v926_v52 }
 0x3bb   :  { %1261 = vmatpush.bf16.xpose.msra.mxu2 %v1252_v24  ;;  %v1271_v25 = vsel %vm518_vm9, %v1103_v20, 0  ;;  %v1106_v26 = vpack.i.b16 %v1105_v23, %v1104_v22  ;;  %v908_v62 = vsel %vm182_vm8, 0, %v907_v55  ;;  %v964_v14 = vperm.slane %v960_v7, %v2210_v5 }
 0x3bc   :  { %1280 = vmatpush.bf16.xpose.msra.mxu3 %v1271_v25  ;;  %v940_v2 = vrot.slane %v908_v62, 4  ;;  %v935_v22 = vsel %vm182_vm8, %v907_v55, %v900_v54 }
 0x3bd   :  { %v1290_v27 = vsel %vm518_vm9, %v1106_v26, 0  ;;  %v965_v19 = vrot.slane %v964_v14, 4  ;;  %v939_v25 = vperm.slane %v935_v22, %v2210_v5 }
 0x3be   :  { %1299 = vmatpush.bf16.xpose.msrb.mxu0 %v1290_v27  ;;  %v941_v12 = vsel %vm182_vm8, %v940_v2, %v906_v6 }
 0x3bf   :  { %v945_v15 = vperm.slane %v941_v12, %v2210_v5 }
 0x3c1   :  { %v946_v24 = vrot.slane %v945_v15, 4 }
 0x3c3   :  { %v947_v28 = vsel %vm182_vm8, %v946_v24, %v939_v25 }
 0x3c4   :  { %v951_v33 = vperm.slane %v947_v28, %v2216_v21 }
 0x3c6   :  { %v976_v42 = vshrl.u32 %v951_v33, 16  ;;  %v952_v44 = vrot.slane %v951_v33, 4 }
 0x3c8   :  { %v953_v37 = vsel %vm182_vm8, 0, %v952_v44 }
 0x3c9   :  { %v982_v46 = vshrl.u32 %v953_v37, 16 }
 0x3fd   :  { %v636_v56 = vpop.xlane.xlu1 %635 }
 0x3fe   :  { %2018 = vrcp.f32 %v636_v56 }
 0x404   :  { %v2019_v4 = vpop.eup %2018 }
 0x405   :  { %v650_v9 = vmul.f32 %v2019_v4, %v2342_v59  ;;  %v958_v59 = vperm.slane %v954_v17, %v2210_v5 }
 0x406   :  { %v639_v11 = vpop.xlane.xlu2 %638 }
 0x407   :  { %2020 = vrcp.f32 %v639_v11  ;;  %v654_v13 = vpack.c.bf16 %v650_v9, %v650_v9  ;;  %v966_v27 = vsel %vm182_vm8, %v965_v19, %v958_v59 }
 0x408   :  { %v970_v31 = vperm.slane %v966_v27, %v2216_v21 }
 0x409   :  { %1905 = vmatmul.msk.bf16.vlgmr.msrb.gmra.mxu1 %vm518_vm9, %v654_v13 }
 0x40a   :  { %v975_v34 = vpack.i.b16 %v970_v31, %v951_v33  ;;  %v977_v40 = vshrl.u32 %v970_v31, 16  ;;  %v971_v43 = vrot.slane %v970_v31, 4 }
 0x40c   :  { %v642_v18 = vpop.xlane.xlu0 %641  ;;  %v972_v36 = vsel %vm182_vm8, 0, %v971_v43 }
 0x40d   :  { %v2021_v20 = vpop.eup %2020  ;;  %2022 = vrcp.f32 %v642_v18  ;;  %v981_v45 = vpack.i.b16 %v972_v36, %v953_v37  ;;  %v983_v58 = vshrl.u32 %v972_v36, 16 }
 0x40e   :  { %v651_v23 = vmul.f32 %v2021_v20, %v2346_v3 }
 0x410   :  { %v655_v26 = vpack.c.bf16 %v651_v23, %v651_v23 }
 0x412   :  { %1906 = vmatmul.msk.bf16.vlgmr.msrb.gmra.mxu2 %vm518_vm9, %v655_v26 }
 0x413   :  { %v2023_v30 = vpop.eup %2022 }
 0x414   :  { %v652_v32 = vmul.f32 %v2023_v30, %v2350_v8  ;;  %v645_v35 = vpop.xlane.xlu0 %644  ;;  %v978_v8 = vpack.i.b16 %v977_v40, %v976_v42 }
 0x415   :  { %2024 = vrcp.f32 %v645_v35 }
 0x416   :  { %v656_v3 = vpack.c.bf16 %v652_v32, %v652_v32 }
 0x418   :  { %1907 = vmatmul.msk.bf16.vlgmr.msrb.gmra.mxu3 %vm518_vm9, %v656_v3 }
 0x419   :  { %1909 = vmatmul.msk.bf16.vlgmr.msra.gmra.mxu1 %vm518_vm9, %v975_v34 }
 0x41b   :  { %v2025_v38 = vpop.eup %2024 }
 0x41c   :  { %v653_v39 = vmul.f32 %v2025_v38, %v2354_v16  ;;  %v984_v16 = vpack.i.b16 %v983_v58, %v982_v46 }
 0x41e   :  { %v657_v41 = vpack.c.bf16 %v653_v39, %v653_v39 }
 0x420   :  { %1908 = vmatmul.msk.bf16.vlgmr.msra.gmra.mxu0 %vm518_vm9, %v657_v41 }
 0x422   :  { %1910 = vmatmul.msk.bf16.vlgmr.msra.gmra.mxu2 %vm518_vm9, %v978_v8 }
 0x428   :  { %1911 = vmatmul.msk.bf16.vlgmr.msra.gmra.mxu3 %vm518_vm9, %v981_v45 }
 0x430   :  { %1912 = vmatmul.msk.bf16.vlgmr.msrb.gmra.mxu0 %vm518_vm9, %v984_v16 }
 0x486   :  { %v674_v47 = vpop.f32.mrf.mxu1 }
 0x487   :  { %v738_v55 = vrot.slane %v674_v47, 4 }
 0x48e   :  { %v676_v48 = vpop.f32.mrf.mxu1 }
 0x495   :  { %v693_v51 = vpop.f32.mrf.mxu2 }
 0x496   :  { %v1244_v52 = vpop.f32.mrf.mxu1  ;;  %v750_v60 = vrot.slane %v693_v51, 4 }
 0x497   :  { %v1305_v53 = vmul.f32 0.35355338, %v1244_v52 }
 0x499   :  { %v2446_v54 = vsel %vm2316_vm11, -1e+30, %v1305_v53 }
 0x49a   :  { %v1313_v56 = vsel %vm518_vm9, %v2446_v54, -inf }
 0x49b   :  { %v712_v57 = vpop.f32.mrf.mxu3  ;;  %1314 = vmax.xlane.f32.xlu1 %v1313_v56 }
 0x49c   :  { %v735_v61 = vrot.slane %v712_v57, 4  ;;  %v739_v62 = vsel %vm182_vm8, %v712_v57, %v738_v55 }
 0x49d   :  { %v747_v0 = vperm.slane %v739_v62, %v2210_v5  ;;  %v731_v1 = vpop.f32.mrf.mxu0  ;;  %v695_v2 = vpop.f32.mrf.mxu2 }
 0x49e   :  { %v737_v4 = vsel %vm182_vm8, %v735_v61, %v674_v47  ;;  %v748_v6 = vrot.slane %v731_v1, 4  ;;  %v751_v7 = vsel %vm182_vm8, %v731_v1, %v750_v60  ;;  %v1246_v9 = vpop.f32.mrf.mxu1 }
 0x49f   :  { %v743_v11 = vperm.slane %v737_v4, %v2210_v5  ;;  %v774_v12 = vrot.slane %v747_v0, 4  ;;  %v759_v13 = vperm.slane %v751_v7, %v2210_v5 }
 0x4a0   :  { %v749_v14 = vsel %vm182_vm8, %v748_v6, %v693_v51 }
 0x4a1   :  { %v762_v15 = vrot.slane %v743_v11, 4  ;;  %v755_v17 = vperm.slane %v749_v14, %v2210_v5  ;;  %v772_v18 = vrot.slane %v759_v13, 4  ;;  %v775_v19 = vsel %vm182_vm8, %v759_v13, %v774_v12 }
 0x4a2   :  { %v783_v20 = vperm.slane %v775_v19, %v2216_v21 }
 0x4a3   :  { %v760_v22 = vrot.slane %v755_v17, 4  ;;  %v763_v59 = vsel %vm182_vm8, %v755_v17, %v762_v15  ;;  %v773_v23 = vsel %vm182_vm8, %v772_v18, %v747_v0  ;;  %v714_v24 = vpop.f32.mrf.mxu3 }
 0x4a4   :  { %v771_v25 = vperm.slane %v763_v59, %v2216_v21  ;;  %v779_v26 = vperm.slane %v773_v23, %v2216_v21  ;;  %v790_v27 = vrot.slane %v783_v20, 4 }
 0x4a5   :  { %v761_v28 = vsel %vm182_vm8, %v760_v22, %v743_v11  ;;  %v733_v30 = vpop.f32.mrf.mxu0  ;;  %v1263_v31 = vpop.f32.mrf.mxu2 }
 0x4a6   :  { %v767_v32 = vperm.slane %v761_v28, %v2216_v21  ;;  %v786_v35 = vrot.slane %v771_v25, 4  ;;  %v788_v33 = vrot.slane %v779_v26, 4  ;;  %v791_v3 = vsel %vm182_vm8, 0.0, %v790_v27  ;;  %v1108_v30 = vpop.permute.xlu0 %1107 }
 0x4a7   :  { %v808_v34 = vrot.slane %v791_v3, 4  ;;  %v1306_v38 = vmul.f32 0.35355338, %v1263_v31  ;;  %v803_v39 = vsel %vm182_vm8, %v790_v27, %v779_v26 }
 0x4a8   :  { %v784_v40 = vrot.slane %v767_v32, 4  ;;  %v787_v41 = vsel %vm182_vm8, 0.0, %v786_v35  ;;  %v789_v42 = vsel %vm182_vm8, 0.0, %v788_v33  ;;  %v792_v43 = vsel %vm182_vm8, %v786_v35, %v767_v32 }
 0x4a9   :  { %v797_v8 = vrot.slane %v787_v41, 4  ;;  %v1310_v44 = vsel %vm2316_vm11, -1e+30, %v1306_v38  ;;  %v796_v36 = vperm.slane %v792_v43, %v2210_v5  ;;  %v807_v37 = vperm.slane %v803_v39, %v2210_v5 }
 0x4aa   :  { %v785_v45 = vsel %vm182_vm8, 0.0, %v784_v40  ;;  %v1316_v58 = vsel %vm518_vm9, %v1310_v44, -inf  ;;  %v809_v46 = vsel %vm182_vm8, %v808_v34, %v789_v42  ;;  %v1118_v40 = vshrl.u32 %v1108_v30, 16 }
 0x4ab   :  { %1317 = vmax.xlane.f32.xlu0 %v1316_v58  ;;  %v1282_v16 = vpop.f32.mrf.mxu3  ;;  %v798_v47 = vsel %vm182_vm8, %v797_v8, %v785_v45  ;;  %v813_v48 = vperm.slane %v809_v46, %v2210_v5  ;;  %v816_v51 = vrot.slane %v796_v36, 4  ;;  %v828_v52 = vrot.slane %v807_v37, 4 }
 0x4ac   :  { %v802_v53 = vperm.slane %v798_v47, %v2210_v5  ;;  %v1307_v15 = vmul.f32 0.35355338, %v1282_v16 }
 0x4ad   :  { %v1301_v55 = vpop.f32.mrf.mxu0  ;;  %v1265_v56 = vpop.f32.mrf.mxu2  ;;  %v826_v57 = vrot.slane %v813_v48, 4  ;;  %v829_v60 = vsel %vm182_vm8, %v813_v48, %v828_v52 }
 0x4ae   :  { %v1308_v61 = vmul.f32 0.35355338, %v1301_v55  ;;  %v814_v62 = vrot.slane %v802_v53, 4  ;;  %v817_v0 = vsel %vm182_vm8, %v802_v53, %v816_v51  ;;  %v837_v4 = vperm.slane %v829_v60, %v2216_v21 }
 0x4af   :  { %v827_v1 = vsel %vm182_vm8, %v826_v57, %v807_v37  ;;  %v825_v2 = vperm.slane %v817_v0, %v2216_v21  ;;  %v1311_v25 = vsel %vm2316_vm11, -1e+30, %v1307_v15 }
 0x4b0   :  { %v1312_v6 = vsel %vm2316_vm11, -1e+30, %v1308_v61  ;;  %v815_v7 = vsel %vm182_vm8, %v814_v62, %v796_v36  ;;  %v833_v9 = vperm.slane %v827_v1, %v2216_v21  ;;  %v842_v13 = vrot.slane %v837_v4, 4 }
 0x4b1   :  { %v1322_v11 = vsel %vm518_vm9, %v1312_v6, -inf  ;;  %v821_v12 = vperm.slane %v815_v7, %v2216_v21  ;;  %v844_v14 = vrot.slane %v825_v2, 4  ;;  %v1319_v26 = vsel %vm518_vm9, %v1311_v25, -inf }
 0x4b2   :  { %1323 = vmax.xlane.f32.xlu2 %v1322_v11  ;;  %v838_v17 = vrot.slane %v833_v9, 4  ;;  %v2493_v20 = vsel %vm182_vm8, %v842_v13, %v825_v2 }
 0x4b3   :  { %v1284_v18 = vpop.f32.mrf.mxu3  ;;  %v840_v19 = vrot.slane %v821_v12, 4  ;;  %v2496_v22 = vsel %vm182_vm8, %v837_v4, %v844_v14 }
 0x4b4   :  { %1109 = vrot.lane.b32.xlu1 %v2206_v63, %s2083_s6  ;;  %v2501_v59 = vsel %vm182_vm8, %v838_v17, %v821_v12 }
 0x4b5   :  { %v1303_v23 = vpop.f32.mrf.mxu0  ;;  %v2504_v24 = vsel %vm182_vm8, %v833_v9, %v840_v19 }
 0x4ba   :  { %1320 = vmax.xlane.f32.xlu2 %v1319_v26 }
 0x4bf   :  { %1113 = vrot.lane.b32.xlu0 %v2336_v50, %s2083_s6 }
 0x4d2   :  { %1111 = vrot.lane.b32.xlu2 %v2332_v49, %s2083_s6 }
 0x50e   :  { %v1315_v63 = vpop.xlane.xlu1 %1314 }
 0x50f   :  { %v1325_v27 = vsub.f32 %v2446_v54, %v1315_v63 }
 0x511   :  { %v1329_v28 = vmul.f32 1.442695, %v1325_v27 }
 0x513   :  { %2026 = vpow2.f32 %v1329_v28 }
 0x519   :  { %v2514_v31 = vpop.eup %2026 }
 0x51a   :  { %v1337_v29 = vsel %vm518_vm9, %v2514_v31, 0.0 }
 0x51b   :  { %1338 = vadd.xlane.f32.xlu2 %v1337_v29 }
 0x51e   :  { %v1318_v32 = vpop.xlane.xlu0 %1317 }
 0x51f   :  { %v1326_v35 = vsub.f32 %v1310_v44, %v1318_v32 }
 0x521   :  { %v1331_v33 = vmul.f32 1.442695, %v1326_v35 }
 0x523   :  { %2028 = vpow2.f32 %v1331_v33 }
 0x525   :  { %v1324_v50 = vpop.xlane.xlu2 %1323 }
 0x526   :  { %v1110_v54 = vpop.permute.xlu1 %1109  ;;  %v1328_v41 = vsub.f32 %v1312_v6, %v1324_v50 }
 0x527   :  { %v1119_v38 = vshrl.u32 %v1110_v54, 16  ;;  %v1117_v42 = vpack.i.b16 %v1110_v54, %v1108_v30 }
 0x528   :  { %v1335_v36 = vmul.f32 1.442695, %v1328_v41 }
 0x529   :  { %v2518_v3 = vpop.eup %2028  ;;  %v1120_v8 = vpack.i.b16 %v1119_v38, %v1118_v40  ;;  %v1131_v37 = vperm.slane %v1117_v42, %v2210_v5 }
 0x52a   :  { %v1340_v49 = vsel %vm518_vm9, %v2518_v3, 0.0 }
 0x52b   :  { %1341 = vadd.xlane.f32.xlu0 %v1340_v49  ;;  %v1157_v58 = vperm.slane %v1120_v8, %v2210_v5  ;;  %v1139_v51 = vrot.slane %v1131_v37, 4 }
 0x52d   :  { %v1321_v34 = vpop.xlane.xlu2 %1320  ;;  %v1165_v56 = vrot.slane %v1157_v58, 4 }
 0x52e   :  { %v1327_v39 = vsub.f32 %v1311_v25, %v1321_v34 }
 0x530   :  { %v1333_v43 = vmul.f32 1.442695, %v1327_v39 }
 0x531   :  { %v1114_v44 = vpop.permute.xlu0 %1113 }
 0x532   :  { %2030 = vpow2.f32 %v1333_v43  ;;  %v1125_v46 = vshrl.u32 %v1114_v44, 16 }
 0x533   :  { %2032 = vpow2.f32 %v1335_v36 }
 0x535   :  { %v1112_v45 = vpop.permute.xlu2 %1111 }
 0x536   :  { %v1123_v16 = vpack.i.b16 %v1114_v44, %v1112_v45  ;;  %v1124_v47 = vshrl.u32 %v1112_v45, 16 }
 0x538   :  { %v2524_v48 = vpop.eup %2030  ;;  %v1126_v52 = vpack.i.b16 %v1125_v46, %v1124_v47  ;;  %v1136_v53 = vperm.slane %v1123_v16, %v2210_v5 }
 0x539   :  { %v1343_v55 = vsel %vm518_vm9, %v2524_v48, 0.0  ;;  %v2536_v9 = vpop.eup %2032 }
 0x53a   :  { %v1137_v57 = vrot.slane %v1136_v53, 4  ;;  %v1140_v60 = vsel %vm182_vm8, %v1136_v53, %v1139_v51  ;;  %v1162_v61 = vperm.slane %v1126_v52, %v2210_v5  ;;  %1344 = vadd.xlane.f32.xlu1 %v1343_v55  ;;  %v1346_v25 = vsel %vm518_vm9, %v2536_v9, 0.0 }
 0x53b   :  { %v1148_v62 = vperm.slane %v1140_v60, %v2216_v21 }
 0x53c   :  { %v1138_v0 = vsel %vm182_vm8, %v1137_v57, %v1131_v37  ;;  %v1163_v1 = vrot.slane %v1162_v61, 4  ;;  %v1166_v2 = vsel %vm182_vm8, %v1162_v61, %v1165_v56 }
 0x53d   :  { %v1144_v4 = vperm.slane %v1138_v0, %v2216_v21  ;;  %v1151_v6 = vrot.slane %v1148_v62, 4  ;;  %v1174_v7 = vperm.slane %v1166_v2, %v2216_v21 }
 0x53e   :  { %v1164_v11 = vsel %vm182_vm8, %v1163_v1, %v1157_v58 }
 0x53f   :  { %v1149_v12 = vrot.slane %v1144_v4, 4  ;;  %v1152_v13 = vsel %vm182_vm8, 0, %v1151_v6  ;;  %v1170_v14 = vperm.slane %v1164_v11, %v2216_v21  ;;  %v1177_v15 = vrot.slane %v1174_v7, 4  ;;  %847 = vrot.lane.b32.xlu0 %v2504_v24, %s2086_s23 }
 0x540   :  { %v1184_v17 = vrot.slane %v1152_v13, 4  ;;  %v1179_v26 = vsel %vm182_vm8, %v1151_v6, %v1144_v4 }
 0x541   :  { %v1150_v18 = vsel %vm182_vm8, 0, %v1149_v12  ;;  %v1175_v19 = vrot.slane %v1170_v14, 4  ;;  %v1178_v23 = vsel %vm182_vm8, 0, %v1177_v15  ;;  %v1198_v24 = vsel %vm182_vm8, %v1177_v15, %v1170_v14 }
 0x542   :  { %v1185_v63 = vsel %vm182_vm8, %v1184_v17, %v1150_v18  ;;  %v1203_v27 = vrot.slane %v1178_v23, 4  ;;  %1347 = vadd.xlane.f32.xlu1 %v1346_v25  ;;  %v1183_v32 = vperm.slane %v1179_v26, %v2210_v5  ;;  %v1202_v49 = vperm.slane %v1198_v24, %v2210_v5 }
 0x543   :  { %v1176_v28 = vsel %vm182_vm8, 0, %v1175_v19  ;;  %v1189_v30 = vperm.slane %v1185_v63, %v2210_v5 }
 0x544   :  { %v1204_v29 = vsel %vm182_vm8, %v1203_v27, %v1176_v28 }
 0x545   :  { %v1190_v35 = vrot.slane %v1189_v30, 4  ;;  %v1208_v33 = vperm.slane %v1204_v29, %v2210_v5 }
 0x547   :  { %v1191_v50 = vsel %vm182_vm8, %v1190_v35, %v1183_v32  ;;  %v1209_v54 = vrot.slane %v1208_v33, 4 }
 0x548   :  { %v1195_v34 = vperm.slane %v1191_v50, %v2216_v21 }
 0x549   :  { %v1210_v38 = vsel %vm182_vm8, %v1209_v54, %v1202_v49 }
 0x54a   :  { %v1214_v39 = vperm.slane %v1210_v38, %v2216_v21  ;;  %v1196_v40 = vrot.slane %v1195_v34, 4  ;;  %v1220_v41 = vshrl.u32 %v1195_v34, 16 }
 0x54c   :  { %v1219_v42 = vpack.i.b16 %v1214_v39, %v1195_v34  ;;  %v1221_v43 = vshrl.u32 %v1214_v39, 16  ;;  %v1197_v8 = vsel %vm182_vm8, 0, %v1196_v40  ;;  %v1215_v44 = vrot.slane %v1214_v39, 4 }
 0x54d   :  { %v1226_v46 = vshrl.u32 %v1197_v8, 16 }
 0x54e   :  { %v1365_v36 = vsel %vm661_vm10, %v1219_v42, 0  ;;  %v1222_v37 = vpack.i.b16 %v1221_v43, %v1220_v41  ;;  %v1216_v45 = vsel %vm182_vm8, 0, %v1215_v44 }
 0x54f   :  { %1374 = vmatpush.bf16.msrb.mxu1 %v1365_v36  ;;  %v1225_v58 = vpack.i.b16 %v1216_v45, %v1197_v8  ;;  %v1227_v16 = vshrl.u32 %v1216_v45, 16 }
 0x550   :  { %v1384_v47 = vsel %vm661_vm10, %v1222_v37, 0 }
 0x551   :  { %1393 = vmatpush.bf16.msrb.mxu2 %v1384_v47  ;;  %v1403_v51 = vsel %vm661_vm10, %v1225_v58, 0  ;;  %v1228_v52 = vpack.i.b16 %v1227_v16, %v1226_v46 }
 0x552   :  { %1412 = vmatpush.bf16.msrb.mxu3 %v1403_v51 }
 0x553   :  { %v1422_v53 = vsel %vm661_vm10, %v1228_v52, 0 }
 0x554   :  { %1431 = vmatpush.bf16.msra.mxu0 %v1422_v53 }
 0x55b   :  { %851 = vrot.lane.b32.xlu1 %v2493_v20, %s2087_s24 }
 0x58e   :  { %v1339_v55 = vpop.xlane.xlu2 %1338 }
 0x58f   :  { %2034 = vrcp.f32 %v1339_v55 }
 0x595   :  { %v2035_v56 = vpop.eup %2034 }
 0x596   :  { %v1353_v57 = vmul.f32 %v2035_v56, %v2514_v31 }
 0x598   :  { %v1357_v60 = vpack.c.bf16 %v1353_v57, %v1353_v57 }
 0x59a   :  { %1913 = vmatmul.msk.bf16.vlgmr.msrb.gmra.mxu1 %vm518_vm9, %v1357_v60 }
 0x59e   :  { %v1342_v61 = vpop.xlane.xlu0 %1341 }
 0x59f   :  { %2036 = vrcp.f32 %v1342_v61 }
 0x5a5   :  { %v2037_v62 = vpop.eup %2036 }
 0x5a6   :  { %v1354_v0 = vmul.f32 %v2037_v62, %v2518_v3 }
 0x5a8   :  { %v1358_v1 = vpack.c.bf16 %v1354_v0, %v1354_v0 }
 0x5aa   :  { %1914 = vmatmul.msk.bf16.vlgmr.msrb.gmra.mxu2 %vm518_vm9, %v1358_v1 }
 0x5ad   :  { %v1345_v2 = vpop.xlane.xlu1 %1344 }
 0x5ae   :  { %2038 = vrcp.f32 %v1345_v2 }
 0x5b4   :  { %v2039_v4 = vpop.eup %2038 }
 0x5b5   :  { %v1355_v20 = vmul.f32 %v2039_v4, %v2524_v48  ;;  %v1348_v6 = vpop.xlane.xlu1 %1347 }
 0x5b6   :  { %2040 = vrcp.f32 %v1348_v6 }
 0x5b7   :  { %v1359_v7 = vpack.c.bf16 %v1355_v20, %v1355_v20 }
 0x5b9   :  { %1915 = vmatmul.msk.bf16.vlgmr.msrb.gmra.mxu3 %vm518_vm9, %v1359_v7 }
 0x5bc   :  { %v2041_v31 = vpop.eup %2040 }
 0x5bd   :  { %v1356_v11 = vmul.f32 %v2041_v31, %v2536_v9 }
 0x5bf   :  { %v1360_v12 = vpack.c.bf16 %v1356_v11, %v1356_v11 }
 0x5c1   :  { %1916 = vmatmul.msk.bf16.vlgmr.msra.gmra.mxu0 %vm518_vm9, %v1360_v12 }
 0x617   :  { %v1376_v3 = vpop.f32.mrf.mxu1 }
 0x618   :  { %v1439_v17 = vrot.slane %v1376_v3, 4 }
 0x61f   :  { %v1378_v13 = vpop.f32.mrf.mxu1 }
 0x62d   :  { %v1395_v14 = vpop.f32.mrf.mxu2 }
 0x62e   :  { %v1451_v19 = vrot.slane %v1395_v14, 4 }
 0x635   :  { %v1397_v15 = vpop.f32.mrf.mxu2 }
 0x63c   :  { %v1414_v18 = vpop.f32.mrf.mxu3 }
 0x63d   :  { %v1437_v23 = vrot.slane %v1414_v18, 4  ;;  %v1440_v48 = vsel %vm182_vm8, %v1414_v18, %v1439_v17 }
 0x63e   :  { %v1448_v25 = vperm.slane %v1440_v48, %v2210_v5  ;;  %v1433_v26 = vpop.f32.mrf.mxu0 }
 0x63f   :  { %v1438_v63 = vsel %vm182_vm8, %v1437_v23, %v1376_v3  ;;  %v1449_v27 = vrot.slane %v1433_v26, 4  ;;  %v1452_v9 = vsel %vm182_vm8, %v1433_v26, %v1451_v19 }
 0x640   :  { %v1444_v28 = vperm.slane %v1438_v63, %v2210_v5  ;;  %v1475_v30 = vrot.slane %v1448_v25, 4  ;;  %v1460_v24 = vperm.slane %v1452_v9, %v2210_v5  ;;  %v1971_v63 = vld [vmem:[%s2732_s7] sm:$0xff]  ;;  %v852_v9 = vpop.permute.xlu1 %851 }
 0x641   :  { %v1450_v29 = vsel %vm182_vm8, %v1449_v27, %v1395_v14  ;;  %v848_v27 = vpop.permute.xlu0 %847 }
 0x642   :  { %v1463_v32 = vrot.slane %v1444_v28, 4  ;;  %v1456_v35 = vperm.slane %v1450_v29, %v2210_v5  ;;  %v1473_v33 = vrot.slane %v1460_v24, 4  ;;  %v1476_v50 = vsel %vm182_vm8, %v1460_v24, %v1475_v30 }
 0x643   :  { %v1484_v49 = vperm.slane %v1476_v50, %v2216_v21 }
 0x644   :  { %v1461_v54 = vrot.slane %v1456_v35, 4  ;;  %v1464_v34 = vsel %vm182_vm8, %v1456_v35, %v1463_v32  ;;  %v1474_v38 = vsel %vm182_vm8, %v1473_v33, %v1448_v25  ;;  %v1416_v39 = vpop.f32.mrf.mxu3 }
 0x645   :  { %v1472_v40 = vperm.slane %v1464_v34, %v2216_v21  ;;  %v1480_v41 = vperm.slane %v1474_v38, %v2216_v21  ;;  %v1491_v42 = vrot.slane %v1484_v49, 4 }
 0x646   :  { %v1462_v43 = vsel %vm182_vm8, %v1461_v54, %v1444_v28  ;;  %v1435_v8 = vpop.f32.mrf.mxu0  ;;  %v858_v28 = vsel %vm518_vm9, %v2501_v59, %v848_v27  ;;  %v1999_v59 = vld [vmem:[%s2733_s8] ss:$0 sm:$0xff] }
 0x647   :  { %v1468_v44 = vperm.slane %v1462_v43, %v2216_v21  ;;  %v1487_v36 = vrot.slane %v1472_v40, 4  ;;  %v1489_v37 = vrot.slane %v1480_v41, 4  ;;  %v1492_v45 = vsel %vm182_vm8, 0.0, %v1491_v42  ;;  %v2050_v40 = vld [vmem:[%s2725_s0] sm:$0xff] }
 0x648   :  { %v1504_v58 = vsel %vm182_vm8, %v1491_v42, %v1480_v41  ;;  %v1509_v46 = vrot.slane %v1492_v45, 4  ;;  %v860_v30 = vsel %vm859_vm12, %v858_v28, %v852_v9  ;;  %v2002_v28 = vld [vmem:[%s2735_s10] ss:$0 sm:$0xff] }
 0x649   :  { %v1485_v16 = vrot.slane %v1468_v44, 4  ;;  %v1488_v47 = vsel %vm182_vm8, 0.0, %v1487_v36  ;;  %v1490_v51 = vsel %vm182_vm8, 0.0, %v1489_v37  ;;  %v1508_v52 = vperm.slane %v1504_v58, %v2210_v5 }
 0x64a   :  { %v1498_v53 = vrot.slane %v1488_v47, 4  ;;  %v1493_v55 = vsel %vm182_vm8, %v1487_v36, %v1468_v44  ;;  %v1510_v56 = vsel %vm182_vm8, %v1509_v46, %v1490_v51  ;;  %v2051_v44 = vld [vmem:[%s2725_s0 + $0x8] sm:$0xff]  ;;  %s2089_s0 = smov [#allocation3]  }
 0x64b   :  { %v1486_v57 = vsel %vm182_vm8, 0.0, %v1485_v16  ;;  %v1497_v60 = vperm.slane %v1493_v55, %v2210_v5  ;;  %v1514_v61 = vperm.slane %v1510_v56, %v2210_v5  ;;  %v1529_v62 = vrot.slane %v1508_v52, 4  ;;  %s1878_s8 = sshll.u32 %s2089_s0, 4  ;;  %s1879_s8 = int_to_ptr.vmem [resolvable:$true] %s1878_s8 }
 0x64c   :  { %v1499_v0 = vsel %vm182_vm8, %v1498_v53, %v1486_v57 }
 0x64d   :  { %v1503_v1 = vperm.slane %v1499_v0, %v2210_v5  ;;  %v1517_v2 = vrot.slane %v1497_v60, 4  ;;  %v1530_v4 = vsel %vm182_vm8, %v1514_v61, %v1529_v62  ;;  %v1527_v20 = vrot.slane %v1514_v61, 4  ;;  %v1973_v0 = vld [vmem:[%s2734_s9] sm:$0xff] }
 0x64e   :  { %v1538_v6 = vperm.slane %v1530_v4, %v2216_v21 }
 0x64f   :  { %v1518_v7 = vsel %vm182_vm8, %v1503_v1, %v1517_v2  ;;  %v1515_v31 = vrot.slane %v1503_v1, 4  ;;  %v1528_v11 = vsel %vm182_vm8, %v1527_v20, %v1508_v52 }
 0x650   :  { %v1526_v12 = vperm.slane %v1518_v7, %v2216_v21  ;;  %v1543_v3 = vrot.slane %v1538_v6, 4  ;;  %v1534_v13 = vperm.slane %v1528_v11, %v2216_v21 }
 0x651   :  { %v1516_v14 = vsel %vm182_vm8, %v1515_v31, %v1497_v60  ;;  %v1974_v60 = vld [vmem:[%s2734_s9 + $0x8] sm:$0xff]  ;;  %s1880_s9 = sshll.u32 %s2738_s13, 4  ;;  %s1881_s9 = int_to_ptr.hbm [resolvable:$true] %s1880_s9 }
 0x652   :  { %v1544_v5 = vsel %vm182_vm8, %v1543_v3, %v1526_v12  ;;  %v1522_v15 = vperm.slane %v1516_v14, %v2216_v21  ;;  %v1539_v17 = vrot.slane %v1534_v13, 4  ;;  %v1545_v48 = vrot.slane %v1526_v12, 4  ;;  %v1972_v21 = vld [vmem:[%s2732_s7 + $0x8] sm:$0xff]  ;;  %1691 = vmatpush.bf16.msra.mxu2 %v1974_v60 }
 0x653   :  { %1552 = vrot.lane.b32.xlu0 %v1544_v5, %s2087_s24  ;;  %1595 = vmatpush.bf16.msra.mxu1 %v1972_v21 }
 0x654   :  { %v1541_v18 = vrot.slane %v1522_v15, 4  ;;  %v1540_v19 = vsel %vm182_vm8, %v1539_v17, %v1522_v15  ;;  %v1546_v25 = vsel %vm182_vm8, %v1538_v6, %v1545_v48  ;;  %v2001_v48 = vld [vmem:[%s2729_s4] ss:$0 sm:$0xff] }
 0x656   :  { %v1542_v23 = vsel %vm182_vm8, %v1534_v13, %v1541_v18  ;;  %1692 = vmatpush.bf16.msra.mxu2 %v1973_v0 }
 0x657   :  { %1548 = vrot.lane.b32.xlu2 %v1542_v23, %s2086_s23  ;;  %1596 = vmatpush.bf16.msra.mxu1 %v1971_v63 }
 0x65b   :  { %1556 = vrot.lane.b32.xlu0 %v1546_v25, %s2088_s25 }
 0x65f   :  { %855 = vrot.lane.b32.xlu2 %v2496_v22, %s2088_s25 }
 0x6b1   :  { %v1549_v26 = vpop.permute.xlu2 %1548 }
 0x6b2   :  { %v1559_v32 = vsel %vm518_vm9, %v1540_v19, %v1549_v26 }
 0x6b9   :  { %v856_v22 = vpop.permute.xlu2 %855 }
 0x6ba   :  { %v862_v24 = vsel %vm861_vm13, %v860_v30, %v856_v22 }
 0x6bb   :  { %863 = vst.msk [vmem:[#allocation2] sm:$0xff] %vm50_vm0, %v862_v24  ;;  %v1982_v24 = vld [vmem:[%s2736_s11 + $0x38] sm:$0xff] }
 0x6bc   :  { %1856 = vmatpush.bf16.msra.mxu3 %v1982_v24 }
 0x6c2   :  { %v1563_v49 = vld [vmem:[#allocation2] sm:$0xff] }
 0x6c5   :  { %v1553_v29 = vpop.permute.xlu0 %1552 }
 0x6c6   :  { %v1560_v35 = vsel %vm859_vm12, %v1559_v32, %v1553_v29 }
 0x6cd   :  { %v1557_v33 = vpop.permute.xlu0 %1556 }
 0x6ce   :  { %v1561_v50 = vsel %vm861_vm13, %v1560_v35, %v1557_v33  ;;  %v1981_v35 = vld [vmem:[%s2736_s11 + $0x30] sm:$0xff] }
 0x6cf   :  { %1562 = vst.msk [vmem:[#allocation2 + $0x8] sm:$0xff] %vm50_vm0, %v1561_v50  ;;  %1857 = vmatpush.bf16.msra.mxu3 %v1981_v35 }
 0x6d6   :  { %v1564_v54 = vld [vmem:[#allocation2 + $0x8] sm:$0xff] }
 0x6d7   :  { %v1565_v34 = vpack.c.bf16 %v1564_v54, %v1563_v49 }
 0x6d9   :  { %1925 = vmatmul.msk.bf16.vlgmr.msra.gmra.mxu1 %vm50_vm0, %v1565_v34 }
 0x756   :  { %v1598_v38 = vpop.f32.mrf.mxu1 }
 0x757   :  { %v1599_v39 = vadd.f32 %v1999_v59, %v1598_v38 }
 0x759   :  { %v2637_v41 = vadd.f32 %v2050_v40, %v1599_v39 }
 0x75b   :  { %v1607_v42 = vsel %vm50_vm0, %v2637_v41, 0.0 }
 0x75c   :  { %1608 = vadd.xlane.f32.xlu1 %v1607_v42 }
 0x75e   :  { %v1600_v43 = vpop.f32.mrf.mxu1 }
 0x75f   :  { %v1601_v8 = vadd.f32 %v1999_v59, %v1600_v43  ;;  %v1980_v59 = vld [vmem:[%s2736_s11 + $0x28] sm:$0xff]  ;;  %v1979_v43 = vld [vmem:[%s2736_s11 + $0x20] sm:$0xff] }
 0x760   :  { %1858 = vmatpush.bf16.msra.mxu3 %v1980_v59 }
 0x761   :  { %v2644_v36 = vadd.f32 %v2051_v44, %v1601_v8 }
 0x763   :  { %v1610_v37 = vsel %vm50_vm0, %v2644_v36, 0.0 }
 0x764   :  { %1611 = vadd.xlane.f32.xlu2 %v1610_v37  ;;  %1859 = vmatpush.bf16.msra.mxu3 %v1979_v43 }
 0x7cf   :  { %v1609_v45 = vpop.xlane.xlu1 %1608 }
 0x7d0   :  { %v1613_v58 = vmul.f32 %v1609_v45, %v2169_v10 }
 0x7d2   :  { %v1615_v46 = vsub.f32 %v2637_v41, %v1613_v58 }
 0x7d4   :  { %v1617_v16 = vmul.f32 %v1615_v46, %v1615_v46 }
 0x7d6   :  { %v1619_v47 = vsel %vm50_vm0, %v1617_v16, 0.0 }
 0x7d7   :  { %v1612_v51 = vpop.xlane.xlu2 %1611  ;;  %1620 = vadd.xlane.f32.xlu0 %v1619_v47 }
 0x7d8   :  { %v1614_v52 = vmul.f32 %v1612_v51, %v2169_v10 }
 0x7da   :  { %v1616_v53 = vsub.f32 %v2644_v36, %v1614_v52 }
 0x7dc   :  { %v1618_v55 = vmul.f32 %v1616_v53, %v1616_v53 }
 0x7de   :  { %v1622_v56 = vsel %vm50_vm0, %v1618_v55, 0.0 }
 0x7df   :  { %1623 = vadd.xlane.f32.xlu1 %v1622_v56 }
 0x84a   :  { %v1621_v57 = vpop.xlane.xlu0 %1620 }
 0x84b   :  { %v1625_v61 = vmul.f32 %v1621_v57, %v2169_v10  ;;  %v1977_v57 = vld [vmem:[%s2736_s11 + $0x10] sm:$0xff] }
 0x84d   :  { %v1627_v62 = vadd.f32 1e-05, %v1625_v61 }
 0x84f   :  { %2042 = vrsqrt.f32 %v1627_v62  ;;  %vm1635_vm15 = vweird.f32 %v1627_v62 }
 0x852   :  { %v1624_v1 = vpop.xlane.xlu1 %1623 }
 0x853   :  { %v1626_v2 = vmul.f32 %v1624_v1, %v2169_v10  ;;  %v2000_v10 = vld [vmem:[%s2728_s3] ss:$0 sm:$0xff] }
 0x855   :  { %v2043_v4 = vpop.eup %2042  ;;  %v1628_v20 = vadd.f32 1e-05, %v1626_v2 }
 0x856   :  { %v1630_v6 = vmul.f32 %v2043_v4, %v1627_v62  ;;  %vm1636_vm14 = vweird.f32 %v2043_v4 }
 0x857   :  { %2044 = vrsqrt.f32 %v1628_v20  ;;  %vm1637_vm1 = vmor %vm1635_vm15, %vm1636_vm14  ;;  %vm1645_vm3 = vweird.f32 %v1628_v20 }
 0x858   :  { %v1631_v7 = vmul.f32 %v2043_v4, %v1630_v6 }
 0x85a   :  { %v1632_v31 = vmul.f32 0.5, %v1631_v7 }
 0x85c   :  { %v1633_v11 = vsub.f32 1.5, %v1632_v31 }
 0x85d   :  { %v2045_v12 = vpop.eup %2044 }
 0x85e   :  { %v1634_v3 = vmul.f32 %v2043_v4, %v1633_v11  ;;  %v1640_v13 = vmul.f32 %v2045_v12, %v1628_v20  ;;  %vm1646_vm2 = vweird.f32 %v2045_v12  ;;  %v1976_v20 = vld [vmem:[%s2736_s11 + $0x8] sm:$0xff] }
 0x85f   :  { %vm1647_vm4 = vmor %vm1645_vm3, %vm1646_vm2 }
 0x860   :  { %v1641_v14 = vmul.f32 %v2045_v12, %v1640_v13  ;;  %v1638_v5 = vsel %vm1637_vm1, %v2043_v4, %v1634_v3  ;;  %v1975_v3 = vld [vmem:[%s2736_s11] sm:$0xff] }
 0x861   :  { %v1649_v18 = vmul.f32 %v1638_v5, %v1615_v46  ;;  %v1978_v46 = vld [vmem:[%s2736_s11 + $0x18] sm:$0xff] }
 0x862   :  { %v1642_v15 = vmul.f32 0.5, %v1641_v14  ;;  %1860 = vmatpush.bf16.msra.mxu3 %v1978_v46 }
 0x863   :  { %v1654_v25 = vmul.f32 %v2000_v10, %v1649_v18 }
 0x864   :  { %v1643_v17 = vsub.f32 1.5, %v1642_v15 }
 0x865   :  { %v1659_v63 = vadd.f32 %v2001_v48, %v1654_v25 }
 0x866   :  { %v1644_v19 = vmul.f32 %v2045_v12, %v1643_v17  ;;  %1861 = vmatpush.bf16.msra.mxu3 %v1977_v57 }
 0x868   :  { %v1648_v23 = vsel %vm1647_vm4, %v2045_v12, %v1644_v19 }
 0x869   :  { %v1650_v21 = vmul.f32 %v1648_v23, %v1616_v53 }
 0x86a   :  { %1862 = vmatpush.bf16.msra.mxu3 %v1976_v20 }
 0x86b   :  { %v1655_v26 = vmul.f32 %v2000_v10, %v1650_v21 }
 0x86d   :  { %v1660_v27 = vadd.f32 %v2001_v48, %v1655_v26 }
 0x86e   :  { %1863 = vmatpush.bf16.msra.mxu3 %v1975_v3 }
 0x86f   :  { %v1661_v9 = vpack.c.bf16 %v1660_v27, %v1659_v63 }
 0x871   :  { %1934 = vmatmul.msk.bf16.vlgmr.msra.gmra.mxu2 %vm50_vm0, %v1661_v9 }
 0x8f4   :  { %v1694_v30 = vpop.f32.mrf.mxu2 }
 0x8f5   :  { %v2672_v22 = vadd.f32 %v2002_v28, %v1694_v30 }
 0x8f7   :  { %v2678_v29 = vmul.f32 0.70710677, %v2672_v22 }
 0x8f9   :  { %v1703_v32 = vmul.f32 %v2678_v29, %v2678_v29 }
 0x8fb   :  { %v1704_v33 = vmin.f32 %v1703_v32, 16.0 }
 0x8fc   :  { %v1696_v50 = vpop.f32.mrf.mxu2 }
 0x8fd   :  { %v1705_v49 = vmul.f32 2.1237322e-06, %v1704_v33  ;;  %v1716_v54 = vmul.f32 3.8918573e-05, %v1704_v33  ;;  %v2685_v34 = vadd.f32 %v2002_v28, %v1696_v50 }
 0x8ff   :  { %v1706_v38 = vadd.f32 0.00028619796, %v1705_v49  ;;  %v1717_v39 = vadd.f32 0.001143296, %v1716_v54  ;;  %v2691_v40 = vmul.f32 0.70710677, %v2685_v34 }
 0x901   :  { %v1718_v42 = vmul.f32 %v1717_v39, %v1704_v33  ;;  %v1743_v8 = vmul.f32 %v2691_v40, %v2691_v40  ;;  %v1707_v44 = vmul.f32 %v1706_v38, %v1704_v33 }
 0x903   :  { %v1719_v37 = vadd.f32 0.014752088, %v1718_v42  ;;  %v1744_v45 = vmin.f32 %v1743_v8, 16.0  ;;  %v1708_v51 = vadd.f32 0.0036580483, %v1707_v44 }
 0x905   :  { %v1720_v58 = vmul.f32 %v1719_v37, %v1704_v33  ;;  %v1745_v16 = vmul.f32 2.1237322e-06, %v1744_v45  ;;  %v1756_v47 = vmul.f32 3.8918573e-05, %v1744_v45  ;;  %v1709_v62 = vmul.f32 %v1708_v51, %v1704_v33 }
 0x907   :  { %v1721_v52 = vadd.f32 0.112945676, %v1720_v58  ;;  %v1746_v53 = vadd.f32 0.00028619796, %v1745_v16  ;;  %v1757_v55 = vadd.f32 0.001143296, %v1756_v47 }
 0x908   :  { %v1710_v7 = vadd.f32 0.05243302, %v1709_v62 }
 0x909   :  { %v1722_v56 = vmul.f32 %v1721_v52, %v1704_v33  ;;  %v1747_v60 = vmul.f32 %v1746_v53, %v1744_v45  ;;  %v1758_v61 = vmul.f32 %v1757_v55, %v1744_v45  ;;  %v1699_v52 = vmul.f32 0.5, %v2672_v22 }
 0x90a   :  { %v1711_v14 = vmul.f32 %v1710_v7, %v1704_v33  ;;  %v1700_v53 = vmul.f32 0.5, %v2685_v34 }
 0x90b   :  { %v1723_v0 = vadd.f32 0.4994258, %v1722_v56  ;;  %v1748_v1 = vadd.f32 0.0036580483, %v1747_v60  ;;  %v1759_v2 = vadd.f32 0.014752088, %v1758_v61 }
 0x90c   :  { %v1712_v18 = vadd.f32 0.18741608, %v1711_v14  ;;  %v2003_v61 = vld [vmem:[%s2737_s12] ss:$0 sm:$0xff]  ;;  %s2090_s12 = smov 128  }
 0x90d   :  { %v1724_v4 = vmul.f32 %v1723_v0, %v1704_v33  ;;  %v1760_v6 = vmul.f32 %v1759_v2, %v1744_v45  ;;  %v1749_v11 = vmul.f32 %v1748_v1, %v1744_v45 }
 0x90e   :  { %v1713_v21 = vmul.f32 %v1712_v18, %v1704_v33 }
 0x90f   :  { %v1725_v31 = vadd.f32 1.0, %v1724_v4  ;;  %v1761_v12 = vadd.f32 0.112945676, %v1760_v6  ;;  %v1750_v5 = vadd.f32 0.05243302, %v1749_v11 }
 0x910   :  { %v1714_v30 = vadd.f32 1.1283791, %v1713_v21 }
 0x911   :  { %2046 = vrcp.f32 %v1725_v31  ;;  %v1762_v13 = vmul.f32 %v1761_v12, %v1744_v45  ;;  %v1751_v23 = vmul.f32 %v1750_v5, %v1744_v45  ;;  %v1737_v63 = vand.u32 2147483648, %v1725_v31 }
 0x912   :  { %v1735_v9 = vand.u32 2147483647, %v1725_v31  ;;  %vm1731_vm6 = vweird.f32 %v1725_v31  ;;  %v1715_v59 = vmul.f32 %v1714_v30, %v2678_v29 }
 0x913   :  { %v1763_v15 = vadd.f32 0.4994258, %v1762_v13  ;;  %v1752_v27 = vadd.f32 0.18741608, %v1751_v23  ;;  %v1738_v35 = vor.u32 1.1754944e-38, %v1737_v63 }
 0x914   :  { %vm1736_vm8 = vcmp.eq.f32.partialorder %v1735_v9, 8.507059e+37 }
 0x915   :  { %v1764_v17 = vmul.f32 %v1763_v15, %v1744_v45  ;;  %v1753_v50 = vmul.f32 %v1752_v27, %v1744_v45 }
 0x917   :  { %v2047_v10 = vpop.eup %2046  ;;  %v1765_v48 = vadd.f32 1.0, %v1764_v17  ;;  %v1754_v33 = vadd.f32 1.1283791, %v1753_v50 }
 0x918   :  { %v1727_v19 = vmul.f32 %v2047_v10, %v1725_v31  ;;  %vm1732_vm5 = vweird.f32 %v2047_v10 }
 0x919   :  { %2048 = vrcp.f32 %v1765_v48  ;;  %vm1733_vm7 = vmor %vm1731_vm6, %vm1732_vm5  ;;  %v1777_v39 = vand.u32 2147483648, %v1765_v48  ;;  %v1775_v8 = vand.u32 2147483647, %v1765_v48  ;;  %vm1771_vm10 = vweird.f32 %v1765_v48 }
 0x91a   :  { %v1728_v25 = vsub.f32 1.0, %v1727_v19  ;;  %v1755_v46 = vmul.f32 %v1754_v33, %v2691_v40 }
 0x91b   :  { %v1778_v37 = vor.u32 1.1754944e-38, %v1777_v39  ;;  %vm1776_vm12 = vcmp.eq.f32.partialorder %v1775_v8, 8.507059e+37 }
 0x91c   :  { %v1729_v26 = vmul.f32 %v2047_v10, %v1728_v25 }
 0x91e   :  { %v1730_v28 = vadd.f32 %v2047_v10, %v1729_v26 }
 0x91f   :  { %v2049_v24 = vpop.eup %2048 }
 0x920   :  { %v1734_v32 = vsel %vm1733_vm7, %v2047_v10, %v1730_v28  ;;  %v1767_v49 = vmul.f32 %v2049_v24, %v1765_v48  ;;  %vm1772_vm9 = vweird.f32 %v2049_v24 }
 0x921   :  { %v1739_v54 = vsel %vm1736_vm8, %v1738_v35, %v1734_v32  ;;  %vm1773_vm11 = vmor %vm1771_vm10, %vm1772_vm9 }
 0x922   :  { %v1768_v38 = vsub.f32 1.0, %v1767_v49  ;;  %v1740_v42 = vmul.f32 %v1739_v54, %v1715_v59 }
 0x924   :  { %v1769_v43 = vmul.f32 %v2049_v24, %v1768_v38  ;;  %v1935_v58 = vclamps-f32 %v1740_v42, 1.0 }
 0x926   :  { %v1770_v44 = vadd.f32 %v2049_v24, %v1769_v43  ;;  %v1783_v51 = vadd.f32 1.0, %v1935_v58 }
 0x928   :  { %v1774_v45 = vsel %vm1773_vm11, %v2049_v24, %v1770_v44  ;;  %v1785_v56 = vmul.f32 %v1783_v51, %v1699_v52 }
 0x929   :  { %v1779_v16 = vsel %vm1776_vm12, %v1778_v37, %v1774_v45 }
 0x92a   :  { %v1780_v47 = vmul.f32 %v1779_v16, %v1755_v46 }
 0x92c   :  { %v1936_v29 = vclamps-f32 %v1780_v47, 1.0 }
 0x92e   :  { %v1784_v55 = vadd.f32 1.0, %v1936_v29 }
 0x930   :  { %v1786_v57 = vmul.f32 %v1784_v55, %v1700_v53 }
 0x932   :  { %v1787_v60 = vpack.c.bf16 %v1786_v57, %v1785_v56 }
 0x934   :  { %1864 = vmatmul.bf16.vlgmr.msra.gmra.mxu3 %v1787_v60 }
 0x9b7   :  { %v1865_v40 = vpop.f32.mrf.mxu3 }
 0x9b8   :  { %v1866_v62 = vadd.f32 %v2003_v61, %v1865_v40 }
 0x9ba   :  { %v1870_v0 = vadd.f32 %v1866_v62, %v2637_v41 }
 0x9bc   :  { %1872 = vst.msk [vmem:[#allocation3] sm:$0xff] %vm50_vm0, %v1870_v0 }
 0x9bf   :  { %v1867_v22 = vpop.f32.mrf.mxu3 }
 0x9c0   :  { %v1868_v34 = vadd.f32 %v2003_v61, %v1867_v22 }
 0x9c2   :  { %v1871_v1 = vadd.f32 %v1868_v34, %v2644_v36 }
 0x9c4   :  { %1873 = vst.msk [vmem:[#allocation3 + $0x8] sm:$0xff] %vm50_vm0, %v1871_v1 }
 0x9c5   :  { %1886 = dma.vmem_to_hbm [thread:$0]  %s1879_s8, 256, %s1881_s9, [#allocation4], %s2090_s12, %s2090_s12, %s2086_s23  }
 0x9c6   :  { %2076 = dma.done.wait [#allocation4], 256  }
 0x9c7   :  { %2077 = vsyncadd [#allocation4], 4294967040 }
 0x9c8   :  { %1891 = vsyncpa [#allocation4], 1 }

</bundles_post_ra>
